<compile_context>
chip_gen: v7x
topology: tpu7x:2x2x1
jax: 0.10.0
libtpu: 0.0.40
codegen_flags: <defaults>
</compile_context>

<pallas_src>
import jax
import jax.numpy as jnp
from jax.experimental import pallas as pl
from jax.experimental.pallas import tpu as pltpu


def _gelu(z):
    # tanh-approximation GELU (EUP tanh); ~1e-3 max abs deviation from torch's erf GELU.
    c = 0.7978845608028654  # sqrt(2/pi)
    return 0.5 * z * (1.0 + jnp.tanh(c * (z + 0.044715 * z * z * z)))


# ----------------------------- fused CTBlock kernel -----------------------------

def ctblock_kernel(x_ref, keybias_ref,
                   edge_ref, rsum_ref, rsumT_ref, sst2_ref, hstack_ref, blockbias_ref,
                   convw_ref, convaff_ref,
                   wattn_ref, bqkv_ref, vecd_ref, w1_ref, b1_ref, w2_ref,
                   o_ref):
    f32 = jnp.float32
    bf16 = jnp.bfloat16

    x = x_ref[...]                          # (TB*L, D) f32, TB samples stacked on rows
    rows, D = x.shape
    TB = rsum_ref.shape[0]
    L = rows // TB
    H = hstack_ref.shape[0] // rows
    nlayers = convw_ref.shape[0]

    m_prev = edge_ref[:, 0:1]               # (rows, 1): 0 at each sample's first row
    m_next = edge_ref[:, 1:2]               # (rows, 1): 0 at each sample's last row
    rsum = rsum_ref[...]                    # (TB, rows)  per-sample row-sum selector
    rsumT = rsumT_ref[...]                  # (rows, TB)  broadcast-back selector
    sst2 = sst2_ref[...]                    # (2D, 2D)    blockdiag group-average matrix

    # -------- CNNBlock: 3 x [Conv1d(k3,p1) -> GroupNorm(8) -> GELU] + residual --------
    for i in range(nlayers):                # static unroll
        xm1 = pltpu.roll(x, shift=1, axis=0) * m_prev          # x[l-1] (edge/sample-safe)
        xp1 = pltpu.roll(x, shift=rows - 1, axis=0) * m_next   # x[l+1]
        xs = jnp.concatenate([xm1, x, xp1], axis=1).astype(bf16)   # (rows, 3D) taps
        caff = convaff_ref[i]               # (3, D) f32 : [conv bias, gn gamma, gn beta]
        y = jnp.dot(xs, convw_ref[i], preferred_element_type=f32) + caff[0:1]

        # GroupNorm(8): per-(sample, group) stats, single moment pass, f32 matmuls.
        ycat = jnp.concatenate([y, y * y], axis=1)                       # (rows, 2D)
        s12 = jnp.dot(rsum, ycat, preferred_element_type=f32)            # (TB, 2D) sums
        g12 = jnp.dot(s12, sst2, preferred_element_type=f32)             # (TB, 2D) = [E[y], E[y^2]]
        gm, gm2 = g12[:, :D], g12[:, D:]
        var = jnp.maximum(gm2 - gm * gm, 0.0)   # single-pass variance (clamped)
        scale = jax.lax.rsqrt(var + 1e-5) * caff[1:2]                    # (TB, D)
        shift = caff[2:3] - gm * scale                                   # (TB, D)
        ssr = jnp.dot(rsumT, jnp.concatenate([scale, shift], axis=1),
                      preferred_element_type=f32)                        # (rows, 2D)
        yn = y * ssr[:, :D] + ssr[:, D:]
        x = _gelu(yn) + x                   # Dropout is identity in eval mode
    x = x * (1.0 / float(nlayers))          # / layer_num

    # -------- TransformerEncoderLayer (post-norm, relu, batch_first) --------
    hd = D // H
    qscale = 1.0 / float(hd) ** 0.5
    wattn = wattn_ref[...]                  # (D, 4D) bf16: [Wq | Wk | Wv | Wo]
    hstack = hstack_ref[...]                # (H*rows, D) bf16 head one-hot (0/1)
    vecd = vecd_ref[...]                    # (6, D) f32: [bo, ln1g, ln1b, b2, ln2g, ln2b]

    # Fused QKV projection: one (rows, D) x (D, 3D) push.
    x16 = x.astype(bf16)
    qkv = jnp.dot(x16, wattn[:, :3 * D], preferred_element_type=f32) + bqkv_ref[...]
    q16 = (qkv[:, :D] * qscale).astype(bf16)
    k16 = qkv[:, D:2 * D].astype(bf16)
    v16 = qkv[:, 2 * D:].astype(bf16)

    # Head-stacked K and [V | head-one-hot] (the one-hot columns yield the per-head
    # softmax denominators broadcast onto that head's channel slots "for free").
    kst = jnp.concatenate([k16] * H, axis=0) * hstack                       # (H*rows, D)
    vaug = jnp.concatenate(
        [jnp.concatenate([v16] * H, axis=0) * hstack, hstack], axis=1)      # (H*rows, 2D)

    # All heads x all samples in ONE score push -> (rows, H*rows) = (32, 128) lane-dense.
    s = jax.lax.dot_general(q16, kst, (((1,), (1,)), ((), ())),
                            preferred_element_type=f32)
    s = s + blockbias_ref[...] + keybias_ref[0]      # cross-sample + key-padding bias
    p = jnp.exp(s - jnp.max(s, axis=-1, keepdims=True))   # global row max cancels per head
    oaug = jnp.dot(p.astype(bf16), vaug, preferred_element_type=f32)        # (rows, 2D)
    attn = oaug[:, :D] * pl.reciprocal(oaug[:, D:], approx=True)
    attnp = (jnp.dot(attn.astype(bf16), wattn[:, 3 * D:], preferred_element_type=f32)
             + vecd[0:1])

    # Residual + LayerNorm1 (post-norm), f32.
    x1 = x + attnp
    m1 = jnp.mean(x1, axis=-1, keepdims=True)
    v1 = jnp.mean((x1 - m1) ** 2, axis=-1, keepdims=True)
    x1n = (x1 - m1) * jax.lax.rsqrt(v1 + 1e-5) * vecd[1:2] + vecd[2:3]

    # Feed-forward (relu) + residual + LayerNorm2.
    h1 = jnp.maximum(
        jnp.dot(x1n.astype(bf16), w1_ref[...], preferred_element_type=f32) + b1_ref[...],
        0.0)
    ff = jnp.dot(h1.astype(bf16), w2_ref[...], preferred_element_type=f32) + vecd[3:4]
    x2 = x1n + ff
    m2 = jnp.mean(x2, axis=-1, keepdims=True)
    v2 = jnp.mean((x2 - m2) ** 2, axis=-1, keepdims=True)
    x2n = (x2 - m2) * jax.lax.rsqrt(v2 + 1e-5) * vecd[4:5] + vecd[5:6]

    # Lane-pack TB samples side-by-side -> (L, TB*D) = (8, 128): full-lane stores.
    o_ref[...] = jnp.concatenate([x2n[t * L:(t + 1) * L, :] for t in range(TB)], axis=1)


# ----------------------------- wrapper -----------------------------

def ctblock_forward(x, pad_mask, consts, weights, *, tb):
    B, L, D = x.shape
    assert B % tb == 0
    nblk = B // tb           # keep this even when possible (v7x megacore sharding)
    rows = tb * L
    edge, rsum, rsumT, sst2, hstack, blockbias = consts
    H = hstack.shape[0] // rows

    x_flat = x.reshape(B * L, D)                                   # contiguous per-block DMA
    # key_padding_mask hoisted to an additive bias, already tiled over heads.
    keybias = jnp.where(pad_mask, -1e30, 0.0).astype(jnp.float32)
    keybias = jnp.tile(keybias.reshape(nblk, 1, rows), (1, 1, H))  # (nblk, 1, H*rows)

    def full(a):
        return pl.BlockSpec(a.shape, lambda i, _n=a.ndim: (0,) * _n)

    consts_weights = (edge, rsum, rsumT, sst2, hstack, blockbias) + tuple(weights)
    in_specs = ([pl.BlockSpec((rows, D), lambda i: (i, 0)),
                 pl.BlockSpec((1, 1, H * rows), lambda i: (i, 0, 0))]
                + [full(a) for a in consts_weights])

    out = pl.pallas_call(
        ctblock_kernel,
        out_shape=jax.ShapeDtypeStruct((L, B * D), jnp.float32),   # lane-packed output
        grid=(nblk,),
        in_specs=in_specs,
        out_specs=pl.BlockSpec((L, tb * D), lambda i: (0, i)),
        compiler_params=pltpu.CompilerParams(
            dimension_semantics=("parallel",),
            vmem_limit_bytes=32 * 1024 * 1024),   # safe on v5e/v6e (128 MiB) and v7x (64 MiB)
    )(x_flat, keybias, *consts_weights)

    # un-pack lanes: (L, B*D) -> (B, L, D)   (wrapper-side layout plumbing only)
    return jnp.transpose(out.reshape(L, B, D), (1, 0, 2))


def make_consts(tb, L, D, H, G):
    rows = tb * L
    pos = jnp.arange(rows)
    samp = pos // L
    # conv edge masks (per-sample left/right padding), replicated for tb samples
    edge = jnp.stack([(pos % L != 0).astype(jnp.float32),
                      (pos % L != (L - 1)).astype(jnp.float32)], axis=1)       # (rows, 2)
    # per-sample row-sum selector and its transpose (GroupNorm stats / broadcast back)
    rsum = (samp[None, :] == jnp.arange(tb)[:, None]).astype(jnp.float32)      # (tb, rows)
    rsumT = rsum.T                                                             # (rows, tb)
    # block-diagonal group-averaging matrix, doubled for [E[y], E[y^2]] in one push
    cs = D // G
    S = (jnp.arange(D)[:, None] // cs == jnp.arange(G)[None, :]).astype(jnp.float32)
    sstn = (S @ S.T) / float(L * cs)
    sst2 = jnp.zeros((2 * D, 2 * D), jnp.float32)
    sst2 = sst2.at[:D, :D].set(sstn).at[D:, D:].set(sstn)
    # head one-hot, stacked per (head, row): used for K/V stacking and softmax denominators
    hd = D // H
    hmask = (jnp.arange(D)[None, :] // hd == jnp.arange(H)[:, None]).astype(jnp.float32)
    hstack = jnp.repeat(hmask, rows, axis=0).astype(jnp.bfloat16)              # (H*rows, D)
    # additive bias forbidding cross-sample attention inside a batch tile
    keysamp = jnp.tile(samp, (H,))
    blockbias = jnp.where(samp[:, None] == keysamp[None, :], 0.0, -1e30
                          ).astype(jnp.float32)                                # (rows, H*rows)
    return edge, rsum, rsumT, sst2, hstack, blockbias


# ----------------------------- driver -----------------------------

if __name__ == "__main__":
    B, L, D, H, FF, G = 8, 8, 32, 4, 64, 8     # d_model=32, nhead=4, dim_feedforward=64
    TB = 4                                      # batch tile -> grid=(2,): even for v7x

    key = jax.random.PRNGKey(0)
    ks = iter(jax.random.split(key, 64))

    def rnd(shape, scale=0.1):
        return scale * jax.random.normal(next(ks), shape, jnp.float32)

    consts = make_consts(TB, L, D, H, G)

    # CNNBlock: 3 x [Conv1d(D, D, 3, padding=1), GroupNorm(8, D), GELU, Dropout]
    # Conv taps stacked along the contraction dim: rows [k*D:(k+1)*D] = weight[:, :, k].T.
    convw = jnp.stack([rnd((3 * D, D)) for _ in range(3)]).astype(jnp.bfloat16)  # (3, 3D, D)
    convaff = jnp.stack([jnp.stack([rnd((D,)),                       # conv bias
                                    jnp.ones((D,), jnp.float32),     # GroupNorm weight
                                    jnp.zeros((D,), jnp.float32)])   # GroupNorm bias
                         for _ in range(3)])                         # (3, 3, D) f32

    # TransformerEncoderLayer params (packed):
    wattn = jnp.concatenate([rnd((D, D)) for _ in range(4)], axis=1).astype(jnp.bfloat16)
    bqkv = jnp.concatenate([rnd((1, D)) for _ in range(3)], axis=1)              # (1, 3D)
    vecd = jnp.stack([rnd((D,)),                                                 # out_proj bias
                      jnp.ones((D,), jnp.float32), jnp.zeros((D,), jnp.float32), # LayerNorm1
                      rnd((D,)),                                                 # linear2 bias
                      jnp.ones((D,), jnp.float32), jnp.zeros((D,), jnp.float32)  # LayerNorm2
                      ])                                                         # (6, D) f32
    w1 = rnd((D, FF)).astype(jnp.bfloat16)
    b1 = rnd((1, FF))
    w2 = rnd((FF, D)).astype(jnp.bfloat16)
    weights = (convw, convaff, wattn, bqkv, vecd, w1, b1, w2)

    x = jax.random.normal(next(ks), (B, L, D), jnp.float32)
    pad_mask = jnp.zeros((B, L), jnp.bool_).at[:, L - 2:].set(True)   # last 2 tokens padded

    out = ctblock_forward(x, pad_mask, consts, weights, tb=TB)
    out = jax.block_until_ready(out)
    assert out.shape == (B, L, D)
    assert bool(jnp.all(jnp.isfinite(out)))
    print("KERNEL_OK")
</pallas_src>

<mosaic_0001>
module attributes {stable_mosaic.version = 11 : i64} {
  func.func @ctblock_kernel(%arg0: i32, %arg1: memref<32x32xf32, #tpu.memory_space<vmem>>, %arg2: memref<1x1x128xf32, #tpu.memory_space<vmem>>, %arg3: memref<32x2xf32, #tpu.memory_space<vmem>>, %arg4: memref<4x32xf32, #tpu.memory_space<vmem>>, %arg5: memref<32x4xf32, #tpu.memory_space<vmem>>, %arg6: memref<64x64xf32, #tpu.memory_space<vmem>>, %arg7: memref<128x32xbf16, #tpu.memory_space<vmem>>, %arg8: memref<32x128xf32, #tpu.memory_space<vmem>>, %arg9: memref<3x96x32xbf16, #tpu.memory_space<vmem>>, %arg10: memref<3x3x32xf32, #tpu.memory_space<vmem>>, %arg11: memref<32x128xbf16, #tpu.memory_space<vmem>>, %arg12: memref<1x96xf32, #tpu.memory_space<vmem>>, %arg13: memref<6x32xf32, #tpu.memory_space<vmem>>, %arg14: memref<32x64xbf16, #tpu.memory_space<vmem>>, %arg15: memref<1x64xf32, #tpu.memory_space<vmem>>, %arg16: memref<64x32xbf16, #tpu.memory_space<vmem>>, %arg17: memref<8x128xf32, #tpu.memory_space<vmem>>) attributes {dimension_semantics = [#tpu.dimension_semantics<parallel>], iteration_bounds = array<i64: 2>, scalar_prefetch = 0 : i64, scratch_operands = 0 : i64, tpu.core_type = #tpu.core_type<tc>, window_params = [{transform_indices = @transform_0, window_bounds = array<i64: 32, 32>}, {transform_indices = @transform_1, window_bounds = array<i64: 1, 1, 128>}, {pipeline_mode = #tpu.pipeline_mode<synchronous>, transform_indices = @transform_2, window_bounds = array<i64: 32, 2>}, {pipeline_mode = #tpu.pipeline_mode<synchronous>, transform_indices = @transform_3, window_bounds = array<i64: 4, 32>}, {pipeline_mode = #tpu.pipeline_mode<synchronous>, transform_indices = @transform_4, window_bounds = array<i64: 32, 4>}, {pipeline_mode = #tpu.pipeline_mode<synchronous>, transform_indices = @transform_5, window_bounds = array<i64: 64, 64>}, {pipeline_mode = #tpu.pipeline_mode<synchronous>, transform_indices = @transform_6, window_bounds = array<i64: 128, 32>}, {pipeline_mode = #tpu.pipeline_mode<synchronous>, transform_indices = @transform_7, window_bounds = array<i64: 32, 128>}, {pipeline_mode = #tpu.pipeline_mode<synchronous>, transform_indices = @transform_8, window_bounds = array<i64: 3, 96, 32>}, {pipeline_mode = #tpu.pipeline_mode<synchronous>, transform_indices = @transform_9, window_bounds = array<i64: 3, 3, 32>}, {pipeline_mode = #tpu.pipeline_mode<synchronous>, transform_indices = @transform_10, window_bounds = array<i64: 32, 128>}, {pipeline_mode = #tpu.pipeline_mode<synchronous>, transform_indices = @transform_11, window_bounds = array<i64: 1, 96>}, {pipeline_mode = #tpu.pipeline_mode<synchronous>, transform_indices = @transform_12, window_bounds = array<i64: 6, 32>}, {pipeline_mode = #tpu.pipeline_mode<synchronous>, transform_indices = @transform_13, window_bounds = array<i64: 32, 64>}, {pipeline_mode = #tpu.pipeline_mode<synchronous>, transform_indices = @transform_14, window_bounds = array<i64: 1, 64>}, {pipeline_mode = #tpu.pipeline_mode<synchronous>, transform_indices = @transform_15, window_bounds = array<i64: 64, 32>}, {transform_indices = @transform_16, window_bounds = array<i64: 8, 128>}]} {
    %c0 = arith.constant 0 : index
    %c0_0 = arith.constant 0 : index
    %0 = vector.load %arg1[%c0, %c0_0] : memref<32x32xf32, #tpu.memory_space<vmem>>, vector<32x32xf32>
    %c0_1 = arith.constant 0 : index
    %c0_2 = arith.constant 0 : index
    %1 = vector.load %arg3[%c0_1, %c0_2] : memref<32x2xf32, #tpu.memory_space<vmem>>, vector<32x1xf32>
    %c0_3 = arith.constant 0 : index
    %c1 = arith.constant 1 : index
    %2 = vector.load %arg3[%c0_3, %c1] : memref<32x2xf32, #tpu.memory_space<vmem>>, vector<32x1xf32>
    %c0_4 = arith.constant 0 : index
    %c0_5 = arith.constant 0 : index
    %3 = vector.load %arg4[%c0_4, %c0_5] : memref<4x32xf32, #tpu.memory_space<vmem>>, vector<4x32xf32>
    %c0_6 = arith.constant 0 : index
    %c0_7 = arith.constant 0 : index
    %4 = vector.load %arg5[%c0_6, %c0_7] : memref<32x4xf32, #tpu.memory_space<vmem>>, vector<32x4xf32>
    %c0_8 = arith.constant 0 : index
    %c0_9 = arith.constant 0 : index
    %5 = vector.load %arg6[%c0_8, %c0_9] : memref<64x64xf32, #tpu.memory_space<vmem>>, vector<64x64xf32>
    %c1_i32 = arith.constant 1 : i32
    %6 = tpu.dynamic_rotate %0 by %c1_i32 dim 0 : vector<32x32xf32>, i32 -> vector<32x32xf32>
    %7 = vector.broadcast %1 : vector<32x1xf32> to vector<32x32xf32>
    %8 = arith.mulf %6, %7 : vector<32x32xf32>
    %c31_i32 = arith.constant 31 : i32
    %9 = tpu.dynamic_rotate %0 by %c31_i32 dim 0 : vector<32x32xf32>, i32 -> vector<32x32xf32>
    %10 = vector.broadcast %2 : vector<32x1xf32> to vector<32x32xf32>
    %11 = arith.mulf %9, %10 : vector<32x32xf32>
    %12 = tpu.concatenate %8, %0, %11 in 1 : vector<32x32xf32>, vector<32x32xf32>, vector<32x32xf32> -> vector<32x96xf32>
    %13 = arith.truncf %12 : vector<32x96xf32> to vector<32x96xbf16>
    %c0_10 = arith.constant 0 : index
    %c0_11 = arith.constant 0 : index
    %c0_12 = arith.constant 0 : index
    %14 = vector.load %arg10[%c0_10, %c0_11, %c0_12] : memref<3x3x32xf32, #tpu.memory_space<vmem>>, vector<1x3x32xf32>
    %15 = vector.shape_cast %14 : vector<1x3x32xf32> to vector<3x32xf32>
    %c0_13 = arith.constant 0 : index
    %c0_14 = arith.constant 0 : index
    %c0_15 = arith.constant 0 : index
    %16 = vector.load %arg9[%c0_13, %c0_14, %c0_15] : memref<3x96x32xbf16, #tpu.memory_space<vmem>>, vector<1x96x32xbf16>
    %17 = vector.shape_cast %16 : vector<1x96x32xbf16> to vector<96x32xbf16>
    %cst = arith.constant dense<0.000000e+00> : vector<32x32xf32>
    %18 = tpu.matmul %13, %17, %cst {dimension_numbers = #tpu.dot_dimension_numbers<[1], [0], [0], [1], [0, 0, 1, 1], [], []>} : vector<32x96xbf16>, vector<96x32xbf16>, vector<32x32xf32> -> vector<32x32xf32>
    %19 = vector.extract_strided_slice %15 {offsets = [0, 0], sizes = [1, 32], strides = [1, 1]} : vector<3x32xf32> to vector<1x32xf32>
    %20 = vector.broadcast %19 : vector<1x32xf32> to vector<32x32xf32>
    %21 = arith.addf %18, %20 : vector<32x32xf32>
    %22 = arith.mulf %21, %21 : vector<32x32xf32>
    %23 = tpu.concatenate %21, %22 in 1 : vector<32x32xf32>, vector<32x32xf32> -> vector<32x64xf32>
    %cst_16 = arith.constant dense<0.000000e+00> : vector<4x64xf32>
    %24 = tpu.matmul %3, %23, %cst_16 {dimension_numbers = #tpu.dot_dimension_numbers<[1], [0], [0], [1], [0, 0, 1, 1], [], []>} : vector<4x32xf32>, vector<32x64xf32>, vector<4x64xf32> -> vector<4x64xf32>
    %cst_17 = arith.constant dense<0.000000e+00> : vector<4x64xf32>
    %25 = tpu.matmul %24, %5, %cst_17 {dimension_numbers = #tpu.dot_dimension_numbers<[1], [0], [0], [1], [0, 0, 1, 1], [], []>} : vector<4x64xf32>, vector<64x64xf32>, vector<4x64xf32> -> vector<4x64xf32>
    %26 = vector.extract_strided_slice %25 {offsets = [0, 0], sizes = [4, 32], strides = [1, 1]} : vector<4x64xf32> to vector<4x32xf32>
    %27 = vector.extract_strided_slice %25 {offsets = [0, 32], sizes = [4, 32], strides = [1, 1]} : vector<4x64xf32> to vector<4x32xf32>
    %28 = arith.mulf %26, %26 : vector<4x32xf32>
    %29 = arith.subf %27, %28 : vector<4x32xf32>
    %cst_18 = arith.constant 0.000000e+00 : f32
    %30 = vector.broadcast %cst_18 : f32 to vector<4x32xf32>
    %31 = arith.maximumf %29, %30 : vector<4x32xf32>
    %cst_19 = arith.constant 9.99999974E-6 : f32
    %32 = vector.broadcast %cst_19 : f32 to vector<4x32xf32>
    %33 = arith.addf %31, %32 : vector<4x32xf32>
    %34 = math.rsqrt %33 : vector<4x32xf32>
    %35 = vector.extract_strided_slice %15 {offsets = [1, 0], sizes = [1, 32], strides = [1, 1]} : vector<3x32xf32> to vector<1x32xf32>
    %36 = vector.broadcast %35 : vector<1x32xf32> to vector<4x32xf32>
    %37 = arith.mulf %34, %36 : vector<4x32xf32>
    %38 = vector.extract_strided_slice %15 {offsets = [2, 0], sizes = [1, 32], strides = [1, 1]} : vector<3x32xf32> to vector<1x32xf32>
    %39 = arith.mulf %26, %37 : vector<4x32xf32>
    %40 = vector.broadcast %38 : vector<1x32xf32> to vector<4x32xf32>
    %41 = arith.subf %40, %39 : vector<4x32xf32>
    %42 = tpu.concatenate %37, %41 in 1 : vector<4x32xf32>, vector<4x32xf32> -> vector<4x64xf32>
    %cst_20 = arith.constant dense<0.000000e+00> : vector<32x64xf32>
    %43 = tpu.matmul %4, %42, %cst_20 {dimension_numbers = #tpu.dot_dimension_numbers<[1], [0], [0], [1], [0, 0, 1, 1], [], []>} : vector<32x4xf32>, vector<4x64xf32>, vector<32x64xf32> -> vector<32x64xf32>
    %44 = vector.extract_strided_slice %43 {offsets = [0, 0], sizes = [32, 32], strides = [1, 1]} : vector<32x64xf32> to vector<32x32xf32>
    %45 = arith.mulf %21, %44 : vector<32x32xf32>
    %46 = vector.extract_strided_slice %43 {offsets = [0, 32], sizes = [32, 32], strides = [1, 1]} : vector<32x64xf32> to vector<32x32xf32>
    %47 = arith.addf %45, %46 : vector<32x32xf32>
    %cst_21 = arith.constant 5.000000e-01 : f32
    %48 = vector.broadcast %cst_21 : f32 to vector<32x32xf32>
    %49 = arith.mulf %48, %47 : vector<32x32xf32>
    %cst_22 = arith.constant 4.471500e-02 : f32
    %50 = vector.broadcast %cst_22 : f32 to vector<32x32xf32>
    %51 = arith.mulf %50, %47 : vector<32x32xf32>
    %52 = arith.mulf %51, %47 : vector<32x32xf32>
    %53 = arith.mulf %52, %47 : vector<32x32xf32>
    %54 = arith.addf %47, %53 : vector<32x32xf32>
    %cst_23 = arith.constant 0.797884583 : f32
    %55 = vector.broadcast %cst_23 : f32 to vector<32x32xf32>
    %56 = arith.mulf %55, %54 : vector<32x32xf32>
    %57 = math.tanh %56 : vector<32x32xf32>
    %cst_24 = arith.constant 1.000000e+00 : f32
    %58 = vector.broadcast %cst_24 : f32 to vector<32x32xf32>
    %59 = arith.addf %58, %57 : vector<32x32xf32>
    %60 = arith.mulf %49, %59 : vector<32x32xf32>
    %61 = arith.addf %60, %0 : vector<32x32xf32>
    %c1_i32_25 = arith.constant 1 : i32
    %62 = tpu.dynamic_rotate %61 by %c1_i32_25 dim 0 : vector<32x32xf32>, i32 -> vector<32x32xf32>
    %63 = vector.broadcast %1 : vector<32x1xf32> to vector<32x32xf32>
    %64 = arith.mulf %62, %63 : vector<32x32xf32>
    %c31_i32_26 = arith.constant 31 : i32
    %65 = tpu.dynamic_rotate %61 by %c31_i32_26 dim 0 : vector<32x32xf32>, i32 -> vector<32x32xf32>
    %66 = vector.broadcast %2 : vector<32x1xf32> to vector<32x32xf32>
    %67 = arith.mulf %65, %66 : vector<32x32xf32>
    %68 = tpu.concatenate %64, %61, %67 in 1 : vector<32x32xf32>, vector<32x32xf32>, vector<32x32xf32> -> vector<32x96xf32>
    %69 = arith.truncf %68 : vector<32x96xf32> to vector<32x96xbf16>
    %c1_27 = arith.constant 1 : index
    %c0_28 = arith.constant 0 : index
    %c0_29 = arith.constant 0 : index
    %70 = vector.load %arg10[%c1_27, %c0_28, %c0_29] : memref<3x3x32xf32, #tpu.memory_space<vmem>>, vector<1x3x32xf32>
    %71 = vector.shape_cast %70 : vector<1x3x32xf32> to vector<3x32xf32>
    %c1_30 = arith.constant 1 : index
    %c0_31 = arith.constant 0 : index
    %c0_32 = arith.constant 0 : index
    %72 = vector.load %arg9[%c1_30, %c0_31, %c0_32] : memref<3x96x32xbf16, #tpu.memory_space<vmem>>, vector<1x96x32xbf16>
    %73 = vector.shape_cast %72 : vector<1x96x32xbf16> to vector<96x32xbf16>
    %cst_33 = arith.constant dense<0.000000e+00> : vector<32x32xf32>
    %74 = tpu.matmul %69, %73, %cst_33 {dimension_numbers = #tpu.dot_dimension_numbers<[1], [0], [0], [1], [0, 0, 1, 1], [], []>} : vector<32x96xbf16>, vector<96x32xbf16>, vector<32x32xf32> -> vector<32x32xf32>
    %75 = vector.extract_strided_slice %71 {offsets = [0, 0], sizes = [1, 32], strides = [1, 1]} : vector<3x32xf32> to vector<1x32xf32>
    %76 = vector.broadcast %75 : vector<1x32xf32> to vector<32x32xf32>
    %77 = arith.addf %74, %76 : vector<32x32xf32>
    %78 = arith.mulf %77, %77 : vector<32x32xf32>
    %79 = tpu.concatenate %77, %78 in 1 : vector<32x32xf32>, vector<32x32xf32> -> vector<32x64xf32>
    %cst_34 = arith.constant dense<0.000000e+00> : vector<4x64xf32>
    %80 = tpu.matmul %3, %79, %cst_34 {dimension_numbers = #tpu.dot_dimension_numbers<[1], [0], [0], [1], [0, 0, 1, 1], [], []>} : vector<4x32xf32>, vector<32x64xf32>, vector<4x64xf32> -> vector<4x64xf32>
    %cst_35 = arith.constant dense<0.000000e+00> : vector<4x64xf32>
    %81 = tpu.matmul %80, %5, %cst_35 {dimension_numbers = #tpu.dot_dimension_numbers<[1], [0], [0], [1], [0, 0, 1, 1], [], []>} : vector<4x64xf32>, vector<64x64xf32>, vector<4x64xf32> -> vector<4x64xf32>
    %82 = vector.extract_strided_slice %81 {offsets = [0, 0], sizes = [4, 32], strides = [1, 1]} : vector<4x64xf32> to vector<4x32xf32>
    %83 = vector.extract_strided_slice %81 {offsets = [0, 32], sizes = [4, 32], strides = [1, 1]} : vector<4x64xf32> to vector<4x32xf32>
    %84 = arith.mulf %82, %82 : vector<4x32xf32>
    %85 = arith.subf %83, %84 : vector<4x32xf32>
    %cst_36 = arith.constant 0.000000e+00 : f32
    %86 = vector.broadcast %cst_36 : f32 to vector<4x32xf32>
    %87 = arith.maximumf %85, %86 : vector<4x32xf32>
    %cst_37 = arith.constant 9.99999974E-6 : f32
    %88 = vector.broadcast %cst_37 : f32 to vector<4x32xf32>
    %89 = arith.addf %87, %88 : vector<4x32xf32>
    %90 = math.rsqrt %89 : vector<4x32xf32>
    %91 = vector.extract_strided_slice %71 {offsets = [1, 0], sizes = [1, 32], strides = [1, 1]} : vector<3x32xf32> to vector<1x32xf32>
    %92 = vector.broadcast %91 : vector<1x32xf32> to vector<4x32xf32>
    %93 = arith.mulf %90, %92 : vector<4x32xf32>
    %94 = vector.extract_strided_slice %71 {offsets = [2, 0], sizes = [1, 32], strides = [1, 1]} : vector<3x32xf32> to vector<1x32xf32>
    %95 = arith.mulf %82, %93 : vector<4x32xf32>
    %96 = vector.broadcast %94 : vector<1x32xf32> to vector<4x32xf32>
    %97 = arith.subf %96, %95 : vector<4x32xf32>
    %98 = tpu.concatenate %93, %97 in 1 : vector<4x32xf32>, vector<4x32xf32> -> vector<4x64xf32>
    %cst_38 = arith.constant dense<0.000000e+00> : vector<32x64xf32>
    %99 = tpu.matmul %4, %98, %cst_38 {dimension_numbers = #tpu.dot_dimension_numbers<[1], [0], [0], [1], [0, 0, 1, 1], [], []>} : vector<32x4xf32>, vector<4x64xf32>, vector<32x64xf32> -> vector<32x64xf32>
    %100 = vector.extract_strided_slice %99 {offsets = [0, 0], sizes = [32, 32], strides = [1, 1]} : vector<32x64xf32> to vector<32x32xf32>
    %101 = arith.mulf %77, %100 : vector<32x32xf32>
    %102 = vector.extract_strided_slice %99 {offsets = [0, 32], sizes = [32, 32], strides = [1, 1]} : vector<32x64xf32> to vector<32x32xf32>
    %103 = arith.addf %101, %102 : vector<32x32xf32>
    %cst_39 = arith.constant 5.000000e-01 : f32
    %104 = vector.broadcast %cst_39 : f32 to vector<32x32xf32>
    %105 = arith.mulf %104, %103 : vector<32x32xf32>
    %cst_40 = arith.constant 4.471500e-02 : f32
    %106 = vector.broadcast %cst_40 : f32 to vector<32x32xf32>
    %107 = arith.mulf %106, %103 : vector<32x32xf32>
    %108 = arith.mulf %107, %103 : vector<32x32xf32>
    %109 = arith.mulf %108, %103 : vector<32x32xf32>
    %110 = arith.addf %103, %109 : vector<32x32xf32>
    %cst_41 = arith.constant 0.797884583 : f32
    %111 = vector.broadcast %cst_41 : f32 to vector<32x32xf32>
    %112 = arith.mulf %111, %110 : vector<32x32xf32>
    %113 = math.tanh %112 : vector<32x32xf32>
    %cst_42 = arith.constant 1.000000e+00 : f32
    %114 = vector.broadcast %cst_42 : f32 to vector<32x32xf32>
    %115 = arith.addf %114, %113 : vector<32x32xf32>
    %116 = arith.mulf %105, %115 : vector<32x32xf32>
    %117 = arith.addf %116, %61 : vector<32x32xf32>
    %c1_i32_43 = arith.constant 1 : i32
    %118 = tpu.dynamic_rotate %117 by %c1_i32_43 dim 0 : vector<32x32xf32>, i32 -> vector<32x32xf32>
    %119 = vector.broadcast %1 : vector<32x1xf32> to vector<32x32xf32>
    %120 = arith.mulf %118, %119 : vector<32x32xf32>
    %c31_i32_44 = arith.constant 31 : i32
    %121 = tpu.dynamic_rotate %117 by %c31_i32_44 dim 0 : vector<32x32xf32>, i32 -> vector<32x32xf32>
    %122 = vector.broadcast %2 : vector<32x1xf32> to vector<32x32xf32>
    %123 = arith.mulf %121, %122 : vector<32x32xf32>
    %124 = tpu.concatenate %120, %117, %123 in 1 : vector<32x32xf32>, vector<32x32xf32>, vector<32x32xf32> -> vector<32x96xf32>
    %125 = arith.truncf %124 : vector<32x96xf32> to vector<32x96xbf16>
    %c2 = arith.constant 2 : index
    %c0_45 = arith.constant 0 : index
    %c0_46 = arith.constant 0 : index
    %126 = vector.load %arg10[%c2, %c0_45, %c0_46] : memref<3x3x32xf32, #tpu.memory_space<vmem>>, vector<1x3x32xf32>
    %127 = vector.shape_cast %126 : vector<1x3x32xf32> to vector<3x32xf32>
    %c2_47 = arith.constant 2 : index
    %c0_48 = arith.constant 0 : index
    %c0_49 = arith.constant 0 : index
    %128 = vector.load %arg9[%c2_47, %c0_48, %c0_49] : memref<3x96x32xbf16, #tpu.memory_space<vmem>>, vector<1x96x32xbf16>
    %129 = vector.shape_cast %128 : vector<1x96x32xbf16> to vector<96x32xbf16>
    %cst_50 = arith.constant dense<0.000000e+00> : vector<32x32xf32>
    %130 = tpu.matmul %125, %129, %cst_50 {dimension_numbers = #tpu.dot_dimension_numbers<[1], [0], [0], [1], [0, 0, 1, 1], [], []>} : vector<32x96xbf16>, vector<96x32xbf16>, vector<32x32xf32> -> vector<32x32xf32>
    %131 = vector.extract_strided_slice %127 {offsets = [0, 0], sizes = [1, 32], strides = [1, 1]} : vector<3x32xf32> to vector<1x32xf32>
    %132 = vector.broadcast %131 : vector<1x32xf32> to vector<32x32xf32>
    %133 = arith.addf %130, %132 : vector<32x32xf32>
    %134 = arith.mulf %133, %133 : vector<32x32xf32>
    %135 = tpu.concatenate %133, %134 in 1 : vector<32x32xf32>, vector<32x32xf32> -> vector<32x64xf32>
    %cst_51 = arith.constant dense<0.000000e+00> : vector<4x64xf32>
    %136 = tpu.matmul %3, %135, %cst_51 {dimension_numbers = #tpu.dot_dimension_numbers<[1], [0], [0], [1], [0, 0, 1, 1], [], []>} : vector<4x32xf32>, vector<32x64xf32>, vector<4x64xf32> -> vector<4x64xf32>
    %cst_52 = arith.constant dense<0.000000e+00> : vector<4x64xf32>
    %137 = tpu.matmul %136, %5, %cst_52 {dimension_numbers = #tpu.dot_dimension_numbers<[1], [0], [0], [1], [0, 0, 1, 1], [], []>} : vector<4x64xf32>, vector<64x64xf32>, vector<4x64xf32> -> vector<4x64xf32>
    %138 = vector.extract_strided_slice %137 {offsets = [0, 0], sizes = [4, 32], strides = [1, 1]} : vector<4x64xf32> to vector<4x32xf32>
    %139 = vector.extract_strided_slice %137 {offsets = [0, 32], sizes = [4, 32], strides = [1, 1]} : vector<4x64xf32> to vector<4x32xf32>
    %140 = arith.mulf %138, %138 : vector<4x32xf32>
    %141 = arith.subf %139, %140 : vector<4x32xf32>
    %cst_53 = arith.constant 0.000000e+00 : f32
    %142 = vector.broadcast %cst_53 : f32 to vector<4x32xf32>
    %143 = arith.maximumf %141, %142 : vector<4x32xf32>
    %cst_54 = arith.constant 9.99999974E-6 : f32
    %144 = vector.broadcast %cst_54 : f32 to vector<4x32xf32>
    %145 = arith.addf %143, %144 : vector<4x32xf32>
    %146 = math.rsqrt %145 : vector<4x32xf32>
    %147 = vector.extract_strided_slice %127 {offsets = [1, 0], sizes = [1, 32], strides = [1, 1]} : vector<3x32xf32> to vector<1x32xf32>
    %148 = vector.broadcast %147 : vector<1x32xf32> to vector<4x32xf32>
    %149 = arith.mulf %146, %148 : vector<4x32xf32>
    %150 = vector.extract_strided_slice %127 {offsets = [2, 0], sizes = [1, 32], strides = [1, 1]} : vector<3x32xf32> to vector<1x32xf32>
    %151 = arith.mulf %138, %149 : vector<4x32xf32>
    %152 = vector.broadcast %150 : vector<1x32xf32> to vector<4x32xf32>
    %153 = arith.subf %152, %151 : vector<4x32xf32>
    %154 = tpu.concatenate %149, %153 in 1 : vector<4x32xf32>, vector<4x32xf32> -> vector<4x64xf32>
    %cst_55 = arith.constant dense<0.000000e+00> : vector<32x64xf32>
    %155 = tpu.matmul %4, %154, %cst_55 {dimension_numbers = #tpu.dot_dimension_numbers<[1], [0], [0], [1], [0, 0, 1, 1], [], []>} : vector<32x4xf32>, vector<4x64xf32>, vector<32x64xf32> -> vector<32x64xf32>
    %156 = vector.extract_strided_slice %155 {offsets = [0, 0], sizes = [32, 32], strides = [1, 1]} : vector<32x64xf32> to vector<32x32xf32>
    %157 = arith.mulf %133, %156 : vector<32x32xf32>
    %158 = vector.extract_strided_slice %155 {offsets = [0, 32], sizes = [32, 32], strides = [1, 1]} : vector<32x64xf32> to vector<32x32xf32>
    %159 = arith.addf %157, %158 : vector<32x32xf32>
    %cst_56 = arith.constant 5.000000e-01 : f32
    %160 = vector.broadcast %cst_56 : f32 to vector<32x32xf32>
    %161 = arith.mulf %160, %159 : vector<32x32xf32>
    %cst_57 = arith.constant 4.471500e-02 : f32
    %162 = vector.broadcast %cst_57 : f32 to vector<32x32xf32>
    %163 = arith.mulf %162, %159 : vector<32x32xf32>
    %164 = arith.mulf %163, %159 : vector<32x32xf32>
    %165 = arith.mulf %164, %159 : vector<32x32xf32>
    %166 = arith.addf %159, %165 : vector<32x32xf32>
    %cst_58 = arith.constant 0.797884583 : f32
    %167 = vector.broadcast %cst_58 : f32 to vector<32x32xf32>
    %168 = arith.mulf %167, %166 : vector<32x32xf32>
    %169 = math.tanh %168 : vector<32x32xf32>
    %cst_59 = arith.constant 1.000000e+00 : f32
    %170 = vector.broadcast %cst_59 : f32 to vector<32x32xf32>
    %171 = arith.addf %170, %169 : vector<32x32xf32>
    %172 = arith.mulf %161, %171 : vector<32x32xf32>
    %173 = arith.addf %172, %117 : vector<32x32xf32>
    %cst_60 = arith.constant 0.333333343 : f32
    %174 = vector.broadcast %cst_60 : f32 to vector<32x32xf32>
    %175 = arith.mulf %173, %174 : vector<32x32xf32>
    %c0_61 = arith.constant 0 : index
    %c0_62 = arith.constant 0 : index
    %176 = vector.load %arg11[%c0_61, %c0_62] : memref<32x128xbf16, #tpu.memory_space<vmem>>, vector<32x128xbf16>
    %c0_63 = arith.constant 0 : index
    %c0_64 = arith.constant 0 : index
    %177 = vector.load %arg7[%c0_63, %c0_64] : memref<128x32xbf16, #tpu.memory_space<vmem>>, vector<128x32xbf16>
    %c0_65 = arith.constant 0 : index
    %c0_66 = arith.constant 0 : index
    %178 = vector.load %arg13[%c0_65, %c0_66] : memref<6x32xf32, #tpu.memory_space<vmem>>, vector<6x32xf32>
    %179 = arith.truncf %175 : vector<32x32xf32> to vector<32x32xbf16>
    %180 = vector.extract_strided_slice %176 {offsets = [0, 0], sizes = [32, 96], strides = [1, 1]} : vector<32x128xbf16> to vector<32x96xbf16>
    %cst_67 = arith.constant dense<0.000000e+00> : vector<32x96xf32>
    %181 = tpu.matmul %179, %180, %cst_67 {dimension_numbers = #tpu.dot_dimension_numbers<[1], [0], [0], [1], [0, 0, 1, 1], [], []>} : vector<32x32xbf16>, vector<32x96xbf16>, vector<32x96xf32> -> vector<32x96xf32>
    %c0_68 = arith.constant 0 : index
    %c0_69 = arith.constant 0 : index
    %182 = vector.load %arg12[%c0_68, %c0_69] : memref<1x96xf32, #tpu.memory_space<vmem>>, vector<1x96xf32>
    %183 = vector.broadcast %182 : vector<1x96xf32> to vector<32x96xf32>
    %184 = arith.addf %181, %183 : vector<32x96xf32>
    %185 = vector.extract_strided_slice %184 {offsets = [0, 0], sizes = [32, 32], strides = [1, 1]} : vector<32x96xf32> to vector<32x32xf32>
    %cst_70 = arith.constant 0.353553385 : f32
    %186 = vector.broadcast %cst_70 : f32 to vector<32x32xf32>
    %187 = arith.mulf %185, %186 : vector<32x32xf32>
    %188 = arith.truncf %187 : vector<32x32xf32> to vector<32x32xbf16>
    %189 = vector.extract_strided_slice %184 {offsets = [0, 32], sizes = [32, 32], strides = [1, 1]} : vector<32x96xf32> to vector<32x32xf32>
    %190 = arith.truncf %189 : vector<32x32xf32> to vector<32x32xbf16>
    %191 = vector.extract_strided_slice %184 {offsets = [0, 64], sizes = [32, 32], strides = [1, 1]} : vector<32x96xf32> to vector<32x32xf32>
    %192 = arith.truncf %191 : vector<32x32xf32> to vector<32x32xbf16>
    %193 = tpu.concatenate %190, %190, %190, %190 in 0 : vector<32x32xbf16>, vector<32x32xbf16>, vector<32x32xbf16>, vector<32x32xbf16> -> vector<128x32xbf16>
    %194 = arith.mulf %193, %177 : vector<128x32xbf16>
    %195 = tpu.concatenate %192, %192, %192, %192 in 0 : vector<32x32xbf16>, vector<32x32xbf16>, vector<32x32xbf16>, vector<32x32xbf16> -> vector<128x32xbf16>
    %196 = arith.mulf %195, %177 : vector<128x32xbf16>
    %197 = tpu.concatenate %196, %177 in 1 : vector<128x32xbf16>, vector<128x32xbf16> -> vector<128x64xbf16>
    %cst_71 = arith.constant dense<0.000000e+00> : vector<32x128xf32>
    %198 = tpu.matmul %188, %194, %cst_71 {dimension_numbers = #tpu.dot_dimension_numbers<[1], [1], [0], [0], [0, 0, 1, 0], [], []>} : vector<32x32xbf16>, vector<128x32xbf16>, vector<32x128xf32> -> vector<32x128xf32>
    %c0_72 = arith.constant 0 : index
    %c0_73 = arith.constant 0 : index
    %199 = vector.load %arg8[%c0_72, %c0_73] : memref<32x128xf32, #tpu.memory_space<vmem>>, vector<32x128xf32>
    %200 = arith.addf %198, %199 : vector<32x128xf32>
    %c0_74 = arith.constant 0 : index
    %c0_75 = arith.constant 0 : index
    %c0_76 = arith.constant 0 : index
    %201 = vector.load %arg2[%c0_74, %c0_75, %c0_76] : memref<1x1x128xf32, #tpu.memory_space<vmem>>, vector<1x1x128xf32>
    %202 = vector.shape_cast %201 : vector<1x1x128xf32> to vector<1x128xf32>
    %203 = vector.broadcast %202 : vector<1x128xf32> to vector<32x128xf32>
    %204 = arith.addf %200, %203 : vector<32x128xf32>
    %cst_77 = arith.constant dense<0xFF800000> : vector<32xf32>
    %205 = vector.multi_reduction <maximumf>, %204, %cst_77 [1] : vector<32x128xf32> to vector<32xf32>
    %206 = vector.shape_cast %205 : vector<32xf32> to vector<32x1xf32>
    %207 = vector.broadcast %206 : vector<32x1xf32> to vector<32x128xf32>
    %208 = arith.subf %204, %207 : vector<32x128xf32>
    %209 = math.exp %208 : vector<32x128xf32>
    %210 = arith.truncf %209 : vector<32x128xf32> to vector<32x128xbf16>
    %cst_78 = arith.constant dense<0.000000e+00> : vector<32x64xf32>
    %211 = tpu.matmul %210, %197, %cst_78 {dimension_numbers = #tpu.dot_dimension_numbers<[1], [0], [0], [1], [0, 0, 1, 1], [], []>} : vector<32x128xbf16>, vector<128x64xbf16>, vector<32x64xf32> -> vector<32x64xf32>
    %212 = vector.extract_strided_slice %211 {offsets = [0, 0], sizes = [32, 32], strides = [1, 1]} : vector<32x64xf32> to vector<32x32xf32>
    %213 = vector.extract_strided_slice %211 {offsets = [0, 32], sizes = [32, 32], strides = [1, 1]} : vector<32x64xf32> to vector<32x32xf32>
    %214 = tpu.reciprocal %213 {approx = true} : vector<32x32xf32> -> vector<32x32xf32>
    %215 = arith.mulf %212, %214 : vector<32x32xf32>
    %216 = arith.truncf %215 : vector<32x32xf32> to vector<32x32xbf16>
    %217 = vector.extract_strided_slice %176 {offsets = [0, 96], sizes = [32, 32], strides = [1, 1]} : vector<32x128xbf16> to vector<32x32xbf16>
    %cst_79 = arith.constant dense<0.000000e+00> : vector<32x32xf32>
    %218 = tpu.matmul %216, %217, %cst_79 {dimension_numbers = #tpu.dot_dimension_numbers<[1], [0], [0], [1], [0, 0, 1, 1], [], []>} : vector<32x32xbf16>, vector<32x32xbf16>, vector<32x32xf32> -> vector<32x32xf32>
    %219 = vector.extract_strided_slice %178 {offsets = [0, 0], sizes = [1, 32], strides = [1, 1]} : vector<6x32xf32> to vector<1x32xf32>
    %220 = vector.broadcast %219 : vector<1x32xf32> to vector<32x32xf32>
    %221 = arith.addf %218, %220 : vector<32x32xf32>
    %222 = arith.addf %175, %221 : vector<32x32xf32>
    %cst_80 = arith.constant dense<0.000000e+00> : vector<32xf32>
    %223 = vector.multi_reduction <add>, %222, %cst_80 [1] : vector<32x32xf32> to vector<32xf32>
    %224 = vector.shape_cast %223 : vector<32xf32> to vector<32x1xf32>
    %cst_81 = arith.constant 3.200000e+01 : f32
    %225 = vector.broadcast %cst_81 : f32 to vector<32x1xf32>
    %226 = arith.divf %224, %225 : vector<32x1xf32>
    %227 = vector.broadcast %226 : vector<32x1xf32> to vector<32x32xf32>
    %228 = arith.subf %222, %227 : vector<32x32xf32>
    %229 = arith.mulf %228, %228 : vector<32x32xf32>
    %cst_82 = arith.constant dense<0.000000e+00> : vector<32xf32>
    %230 = vector.multi_reduction <add>, %229, %cst_82 [1] : vector<32x32xf32> to vector<32xf32>
    %231 = vector.shape_cast %230 : vector<32xf32> to vector<32x1xf32>
    %cst_83 = arith.constant 3.200000e+01 : f32
    %232 = vector.broadcast %cst_83 : f32 to vector<32x1xf32>
    %233 = arith.divf %231, %232 : vector<32x1xf32>
    %234 = vector.broadcast %226 : vector<32x1xf32> to vector<32x32xf32>
    %235 = arith.subf %222, %234 : vector<32x32xf32>
    %cst_84 = arith.constant 9.99999974E-6 : f32
    %236 = vector.broadcast %cst_84 : f32 to vector<32x1xf32>
    %237 = arith.addf %233, %236 : vector<32x1xf32>
    %238 = math.rsqrt %237 : vector<32x1xf32>
    %239 = vector.broadcast %238 : vector<32x1xf32> to vector<32x32xf32>
    %240 = arith.mulf %235, %239 : vector<32x32xf32>
    %241 = vector.extract_strided_slice %178 {offsets = [1, 0], sizes = [1, 32], strides = [1, 1]} : vector<6x32xf32> to vector<1x32xf32>
    %242 = vector.broadcast %241 : vector<1x32xf32> to vector<32x32xf32>
    %243 = arith.mulf %240, %242 : vector<32x32xf32>
    %244 = vector.extract_strided_slice %178 {offsets = [2, 0], sizes = [1, 32], strides = [1, 1]} : vector<6x32xf32> to vector<1x32xf32>
    %245 = vector.broadcast %244 : vector<1x32xf32> to vector<32x32xf32>
    %246 = arith.addf %243, %245 : vector<32x32xf32>
    %247 = arith.truncf %246 : vector<32x32xf32> to vector<32x32xbf16>
    %c0_85 = arith.constant 0 : index
    %c0_86 = arith.constant 0 : index
    %248 = vector.load %arg14[%c0_85, %c0_86] : memref<32x64xbf16, #tpu.memory_space<vmem>>, vector<32x64xbf16>
    %cst_87 = arith.constant dense<0.000000e+00> : vector<32x64xf32>
    %249 = tpu.matmul %247, %248, %cst_87 {dimension_numbers = #tpu.dot_dimension_numbers<[1], [0], [0], [1], [0, 0, 1, 1], [], []>} : vector<32x32xbf16>, vector<32x64xbf16>, vector<32x64xf32> -> vector<32x64xf32>
    %c0_88 = arith.constant 0 : index
    %c0_89 = arith.constant 0 : index
    %250 = vector.load %arg15[%c0_88, %c0_89] : memref<1x64xf32, #tpu.memory_space<vmem>>, vector<1x64xf32>
    %251 = vector.broadcast %250 : vector<1x64xf32> to vector<32x64xf32>
    %252 = arith.addf %249, %251 : vector<32x64xf32>
    %cst_90 = arith.constant 0.000000e+00 : f32
    %253 = vector.broadcast %cst_90 : f32 to vector<32x64xf32>
    %254 = arith.maximumf %252, %253 : vector<32x64xf32>
    %255 = arith.truncf %254 : vector<32x64xf32> to vector<32x64xbf16>
    %c0_91 = arith.constant 0 : index
    %c0_92 = arith.constant 0 : index
    %256 = vector.load %arg16[%c0_91, %c0_92] : memref<64x32xbf16, #tpu.memory_space<vmem>>, vector<64x32xbf16>
    %cst_93 = arith.constant dense<0.000000e+00> : vector<32x32xf32>
    %257 = tpu.matmul %255, %256, %cst_93 {dimension_numbers = #tpu.dot_dimension_numbers<[1], [0], [0], [1], [0, 0, 1, 1], [], []>} : vector<32x64xbf16>, vector<64x32xbf16>, vector<32x32xf32> -> vector<32x32xf32>
    %258 = vector.extract_strided_slice %178 {offsets = [3, 0], sizes = [1, 32], strides = [1, 1]} : vector<6x32xf32> to vector<1x32xf32>
    %259 = vector.broadcast %258 : vector<1x32xf32> to vector<32x32xf32>
    %260 = arith.addf %257, %259 : vector<32x32xf32>
    %261 = arith.addf %246, %260 : vector<32x32xf32>
    %cst_94 = arith.constant dense<0.000000e+00> : vector<32xf32>
    %262 = vector.multi_reduction <add>, %261, %cst_94 [1] : vector<32x32xf32> to vector<32xf32>
    %263 = vector.shape_cast %262 : vector<32xf32> to vector<32x1xf32>
    %cst_95 = arith.constant 3.200000e+01 : f32
    %264 = vector.broadcast %cst_95 : f32 to vector<32x1xf32>
    %265 = arith.divf %263, %264 : vector<32x1xf32>
    %266 = vector.broadcast %265 : vector<32x1xf32> to vector<32x32xf32>
    %267 = arith.subf %261, %266 : vector<32x32xf32>
    %268 = arith.mulf %267, %267 : vector<32x32xf32>
    %cst_96 = arith.constant dense<0.000000e+00> : vector<32xf32>
    %269 = vector.multi_reduction <add>, %268, %cst_96 [1] : vector<32x32xf32> to vector<32xf32>
    %270 = vector.shape_cast %269 : vector<32xf32> to vector<32x1xf32>
    %cst_97 = arith.constant 3.200000e+01 : f32
    %271 = vector.broadcast %cst_97 : f32 to vector<32x1xf32>
    %272 = arith.divf %270, %271 : vector<32x1xf32>
    %273 = vector.broadcast %265 : vector<32x1xf32> to vector<32x32xf32>
    %274 = arith.subf %261, %273 : vector<32x32xf32>
    %cst_98 = arith.constant 9.99999974E-6 : f32
    %275 = vector.broadcast %cst_98 : f32 to vector<32x1xf32>
    %276 = arith.addf %272, %275 : vector<32x1xf32>
    %277 = math.rsqrt %276 : vector<32x1xf32>
    %278 = vector.broadcast %277 : vector<32x1xf32> to vector<32x32xf32>
    %279 = arith.mulf %274, %278 : vector<32x32xf32>
    %280 = vector.extract_strided_slice %178 {offsets = [4, 0], sizes = [1, 32], strides = [1, 1]} : vector<6x32xf32> to vector<1x32xf32>
    %281 = vector.broadcast %280 : vector<1x32xf32> to vector<32x32xf32>
    %282 = arith.mulf %279, %281 : vector<32x32xf32>
    %283 = vector.extract_strided_slice %178 {offsets = [5, 0], sizes = [1, 32], strides = [1, 1]} : vector<6x32xf32> to vector<1x32xf32>
    %284 = vector.broadcast %283 : vector<1x32xf32> to vector<32x32xf32>
    %285 = arith.addf %282, %284 : vector<32x32xf32>
    %286 = vector.extract_strided_slice %285 {offsets = [0, 0], sizes = [8, 32], strides = [1, 1]} : vector<32x32xf32> to vector<8x32xf32>
    %287 = vector.extract_strided_slice %285 {offsets = [8, 0], sizes = [8, 32], strides = [1, 1]} : vector<32x32xf32> to vector<8x32xf32>
    %288 = vector.extract_strided_slice %285 {offsets = [16, 0], sizes = [8, 32], strides = [1, 1]} : vector<32x32xf32> to vector<8x32xf32>
    %289 = vector.extract_strided_slice %285 {offsets = [24, 0], sizes = [8, 32], strides = [1, 1]} : vector<32x32xf32> to vector<8x32xf32>
    %290 = tpu.concatenate %286, %287, %288, %289 in 1 : vector<8x32xf32>, vector<8x32xf32>, vector<8x32xf32>, vector<8x32xf32> -> vector<8x128xf32>
    %c0_99 = arith.constant 0 : index
    %c0_100 = arith.constant 0 : index
    %291 = vector.load %arg17[%c0_99, %c0_100] : memref<8x128xf32, #tpu.memory_space<vmem>>, vector<8x128xf32>
    tpu.vector_store %arg17[%c0_99, %c0_100], %290 {strides = array<i32>} : memref<8x128xf32, #tpu.memory_space<vmem>>, vector<8x128xf32>,
    return
  }
  func.func @transform_0(%arg0: i32) -> (i32, i32) {
    %c0_i32 = arith.constant 0 : i32
    %c0_i32_0 = arith.constant 0 : i32
    return %arg0, %c0_i32 : i32, i32
  }
  func.func @transform_1(%arg0: i32) -> (i32, i32, i32) {
    %c0_i32 = arith.constant 0 : i32
    %c0_i32_0 = arith.constant 0 : i32
    %c0_i32_1 = arith.constant 0 : i32
    return %arg0, %c0_i32, %c0_i32_0 : i32, i32, i32
  }
  func.func @transform_2(%arg0: i32) -> (i32, i32) {
    %c0_i32 = arith.constant 0 : i32
    %c0_i32_0 = arith.constant 0 : i32
    %c0_i32_1 = arith.constant 0 : i32
    return %c0_i32, %c0_i32_0 : i32, i32
  }
  func.func @transform_3(%arg0: i32) -> (i32, i32) {
    %c0_i32 = arith.constant 0 : i32
    %c0_i32_0 = arith.constant 0 : i32
    %c0_i32_1 = arith.constant 0 : i32
    return %c0_i32, %c0_i32_0 : i32, i32
  }
  func.func @transform_4(%arg0: i32) -> (i32, i32) {
    %c0_i32 = arith.constant 0 : i32
    %c0_i32_0 = arith.constant 0 : i32
    %c0_i32_1 = arith.constant 0 : i32
    return %c0_i32, %c0_i32_0 : i32, i32
  }
  func.func @transform_5(%arg0: i32) -> (i32, i32) {
    %c0_i32 = arith.constant 0 : i32
    %c0_i32_0 = arith.constant 0 : i32
    %c0_i32_1 = arith.constant 0 : i32
    return %c0_i32, %c0_i32_0 : i32, i32
  }
  func.func @transform_6(%arg0: i32) -> (i32, i32) {
    %c0_i32 = arith.constant 0 : i32
    %c0_i32_0 = arith.constant 0 : i32
    %c0_i32_1 = arith.constant 0 : i32
    return %c0_i32, %c0_i32_0 : i32, i32
  }
  func.func @transform_7(%arg0: i32) -> (i32, i32) {
    %c0_i32 = arith.constant 0 : i32
    %c0_i32_0 = arith.constant 0 : i32
    %c0_i32_1 = arith.constant 0 : i32
    return %c0_i32, %c0_i32_0 : i32, i32
  }
  func.func @transform_8(%arg0: i32) -> (i32, i32, i32) {
    %c0_i32 = arith.constant 0 : i32
    %c0_i32_0 = arith.constant 0 : i32
    %c0_i32_1 = arith.constant 0 : i32
    %c0_i32_2 = arith.constant 0 : i32
    return %c0_i32, %c0_i32_0, %c0_i32_1 : i32, i32, i32
  }
  func.func @transform_9(%arg0: i32) -> (i32, i32, i32) {
    %c0_i32 = arith.constant 0 : i32
    %c0_i32_0 = arith.constant 0 : i32
    %c0_i32_1 = arith.constant 0 : i32
    %c0_i32_2 = arith.constant 0 : i32
    return %c0_i32, %c0_i32_0, %c0_i32_1 : i32, i32, i32
  }
  func.func @transform_10(%arg0: i32) -> (i32, i32) {
    %c0_i32 = arith.constant 0 : i32
    %c0_i32_0 = arith.constant 0 : i32
    %c0_i32_1 = arith.constant 0 : i32
    return %c0_i32, %c0_i32_0 : i32, i32
  }
  func.func @transform_11(%arg0: i32) -> (i32, i32) {
    %c0_i32 = arith.constant 0 : i32
    %c0_i32_0 = arith.constant 0 : i32
    %c0_i32_1 = arith.constant 0 : i32
    return %c0_i32, %c0_i32_0 : i32, i32
  }
  func.func @transform_12(%arg0: i32) -> (i32, i32) {
    %c0_i32 = arith.constant 0 : i32
    %c0_i32_0 = arith.constant 0 : i32
    %c0_i32_1 = arith.constant 0 : i32
    return %c0_i32, %c0_i32_0 : i32, i32
  }
  func.func @transform_13(%arg0: i32) -> (i32, i32) {
    %c0_i32 = arith.constant 0 : i32
    %c0_i32_0 = arith.constant 0 : i32
    %c0_i32_1 = arith.constant 0 : i32
    return %c0_i32, %c0_i32_0 : i32, i32
  }
  func.func @transform_14(%arg0: i32) -> (i32, i32) {
    %c0_i32 = arith.constant 0 : i32
    %c0_i32_0 = arith.constant 0 : i32
    %c0_i32_1 = arith.constant 0 : i32
    return %c0_i32, %c0_i32_0 : i32, i32
  }
  func.func @transform_15(%arg0: i32) -> (i32, i32) {
    %c0_i32 = arith.constant 0 : i32
    %c0_i32_0 = arith.constant 0 : i32
    %c0_i32_1 = arith.constant 0 : i32
    return %c0_i32, %c0_i32_0 : i32, i32
  }
  func.func @transform_16(%arg0: i32) -> (i32, i32) {
    %c0_i32 = arith.constant 0 : i32
    %c0_i32_0 = arith.constant 0 : i32
    return %c0_i32, %arg0 : i32, i32
  }
}

</mosaic_0001>

<bundles_post_ra>
// kernel: tpu_custom_call.1
= control target key start
LH: loop header
LB: loop body
LE: loop exit
PB: predicated region body
PF: predicated region fallthrough
CT: control target
= control target key end

     0   :  { %s5064_s0 = inlined_call_operand.vmem [shape: f32[64,32], index: 0, kind: input, shape index: {}]   ;;  %s5065_s1 = inlined_call_operand.vmem [shape: f32[2,1,128], index: 1, kind: input, shape index: {}]   ;;  %s5066_s2 = inlined_call_operand.vmem [shape: f32[32,2], index: 2, kind: input, shape index: {}]   ;;  %s5067_s3 = inlined_call_operand.vmem [shape: f32[4,32], index: 3, kind: input, shape index: {}]   ;;  %s5068_s4 = inlined_call_operand.vmem [shape: f32[32,4], index: 4, kind: input, shape index: {}]   ;;  %s5069_s5 = inlined_call_operand.vmem [shape: f32[64,64], index: 5, kind: input, shape index: {}]   ;;  %s5070_s6 = inlined_call_operand.vmem [shape: bf16[128,32], index: 6, kind: input, shape index: {}]   ;;  %s5071_s7 = inlined_call_operand.vmem [shape: f32[32,128], index: 7, kind: input, shape index: {}]   ;;  %s5072_s8 = inlined_call_operand.vmem [shape: bf16[3,96,32], index: 8, kind: input, shape index: {}]   ;;  %s5073_s9 = inlined_call_operand.vmem [shape: f32[3,3,32], index: 9, kind: input, shape index: {}]   ;;  %s5074_s10 = inlined_call_operand.vmem [shape: bf16[32,128], index: 10, kind: input, shape index: {}]   ;;  %s5075_s11 = inlined_call_operand.vmem [shape: f32[1,96], index: 11, kind: input, shape index: {}]   ;;  %s5076_s12 = inlined_call_operand.vmem [shape: f32[6,32], index: 12, kind: input, shape index: {}]   ;;  %s5077_s13 = inlined_call_operand.vmem [shape: bf16[32,64], index: 13, kind: input, shape index: {}]   ;;  %s5078_s14 = inlined_call_operand.vmem [shape: f32[1,64], index: 14, kind: input, shape index: {}]   ;;  %s5079_s15 = inlined_call_operand.vmem [shape: bf16[64,32], index: 15, kind: input, shape index: {}]   ;;  %s5080_s16 = inlined_call_operand.hbm [shape: f32[8,256], index: 16, kind: output, shape index: {}]  }
   0x1   :  { %5091 = sst [smem:[#allocation9_spill]] %s5064_s0 }
   0x2   :  { %21 = vsyncpa [#allocation3], 0 }
   0x3   :  { %23 = vsyncpa [#allocation3 + $0x1], 0  ;;  %s4095_s21 = smov 0   ;;  %s4097_s22 = smov 0  }
   0x4   :  { %s4099_s23 = smov 0   ;;  %s4101_s24 = smov 0  }
   0x5 LB: > { %5092 = sst [smem:[#allocation5_spill]] %s3995_s23  ;;  %s4116_s25 = sadd.s32 4294967295, %s3999_s24   ;;  %s3999_s24 = sphi %s4101_s24, %s5103_s24   ;;  %s3995_s23 = sphi %s4099_s23, %s5105_s23   ;;  %s3991_s22 = sphi %s4097_s22, %s5107_s22   ;;  %s3987_s21 = sphi %s4095_s21, %s5106_s21  }
   0x6   : > { %s3169_s26 = sadd.s32 4294967294, %s3999_s24   ;;  %s4120_s27 = sadd.s32 1, %s3999_s24  }
   0x7   : > { %5093 = sst [smem:[#allocation6_spill]] %s4120_s27  ;;  %s382_s28 = sadd.s32 1, %s3995_s23 }
   0x8   : > { %s379_s29 = ssub.s32 %s3999_s24, %s4120_s27  ;;  %p392_p0 = scmp.ne.s32.totalorder %s3995_s23, %s3991_s22 }
   0x9   : > { %p380_p1 = scmp.eq.s32.totalorder %s379_s29, 0  ;;  %p393_p2 = scmp.eq.s32.totalorder %s4116_s25, 1 }
   0xa   : > { %p398_p3 = scmp.ne.s32.totalorder %s3991_s22, %s3987_s21  ;;  %p399_p4 = scmp.eq.s32.totalorder %s3169_s26, 1 }
   0xb   : > { %s4131_s30 = scalar_select %p380_p1, %s3995_s23, %s382_s28  }
   0xc   : > { %p4133_p5 = por %p393_p2, %p392_p0  ;;  %p4137_p6 = por %p399_p4, %p398_p3 }
   0xd   : > { %5094 = sst [smem:[#allocation7_spill]] %s4131_s30  ;;  %p3172_p7 = scmp.ge.s32.totalorder %s3999_s24, 1 }
   0xe   : > { %s5096_s17 = scalar_select %p4137_p6, 1, 0 }
   0xf   : > { %p474_p8 = scmp.lt.s32.totalorder %s3999_s24, 3 }
  0x10   : > { %5097 = sst [smem:[#allocation8_spill]] %s5096_s17 }
  0x11   : > { %p475_p9 = pnand %p3172_p7, %p474_p8 }
  0x12   : > { %v543_v0 = vld [vmem:[%s5066_s2 + $0x10] sm:$0xff] (!%p475_p9)  ;;  %v541_v1 = vld [vmem:[%s5066_s2] sm:$0xff] (!%p475_p9)  ;;  %s3174_s28 = sshll.u32 (!%p475_p9), %s4116_s25, 2  ;;  %v4001_v2 = vmov (!%p475_p9), 1   ;;  %v544_v3 = vld [vmem:[%s5066_s2 + $0x18] sm:$0xff] (!%p475_p9)  ;;  %s5098_s26 = sld [smem:[#allocation9_spill]] (!%p475_p9)  ;;  %v562_v17 = vlaneseq (!%p475_p9) }
  0x13   : > { %478 = sbr.rel (%p475_p9) target bundleno = 7615 (0x1dbf), region = 84  ;;  %3747 = vset.pattern.permute.xlu1 (!%p475_p9), %v4001_v2  ;;  %3746 = vset.pattern.permute.xlu0 (!%p475_p9), %v4001_v2  ;;  %p528_p10 = scmp.lt.s32.totalorder (!%p475_p9), %s3174_s28, 7  ;;  %v542_v4 = vld [vmem:[%s5066_s2 + $0x8] sm:$0xff] (!%p475_p9)  ;;  %v4002_v5 = vmov (!%p475_p9), 0   ;;  %v3841_v10 = vld [vmem:[%s5072_s8] sm:$0xff] (!%p475_p9)   ;;  %v3843_v14 = vld [vmem:[%s5072_s8 + $0x10] sm:$0xff] (!%p475_p9)  }
  0x14   : > { %611 = vperm.xlu1 (!%p475_p9), %3747, %v543_v0   ;;  %603 = vperm.xlu0 (!%p475_p9), %3746, %v541_v1   ;;  %v3842_v13 = vld [vmem:[%s5072_s8 + $0x8] sm:$0xff] (!%p475_p9)   ;;  %v3844_v15 = vld [vmem:[%s5072_s8 + $0x18] sm:$0xff] (!%p475_p9)   ;;  %v3845_v16 = vld [vmem:[%s5072_s8 + $0x20] sm:$0xff] (!%p475_p9)   ;;  %v4188_v18 = vshrl.u32 (!%p475_p9), %v562_v17, 7  ;;  %vm654_vm2 = vcmask (!%p475_p9), 261120   ;;  %vm659_vm3 = vcmask (!%p475_p9), 523264  }
  0x15   : > { %3399 = vmatprep.subr.bf16.mxu0 (!%p475_p9), %v3841_v10  ;;  %v3846_v19 = vld [vmem:[%s5072_s8 + $0x28] sm:$0xff] (!%p475_p9)   ;;  %vm719_vm4 = vcmask (!%p475_p9), 785408   ;;  %v4261_v17 = vld [vmem:[%s5073_s9] sm:$0x7] (!%p475_p9)  ;;  %vm4006_vm5 = vmmov (!%p475_p9), 0   ;;  %vm978_vm6 = vcmask (!%p475_p9), 31744  }
  0x16   : > { %3400 = vmatpush3.bf16.msra.mxu0 (!%p475_p9), %v3841_v10  ;;  %vm597_vm0 = vcmp.lt.s32.totalorder (!%p475_p9), %v4188_v18, 7  ;;  %vm564_vm1 = vcmp.lt.s32.totalorder (!%p475_p9), %v4188_v18, 1  ;;  %vm991_vm7 = vcmask (!%p475_p9), 1043456   ;;  %p533_p11 = scmp.lt.s32.totalorder (!%p475_p9), %s4116_s25, 1  ;;  %s524_s20 = sand.u32 (!%p475_p9), 1, %s3991_s22  }
  0x17   : > { %3401 = vmatprep.subr.bf16.mxu0 (!%p475_p9), %v3842_v13  ;;  %s3173_s23 = sshll.u32 (!%p475_p9), %s524_s20, 3  ;;  %s3277_s27 = sshll.u32 (!%p475_p9), %s4116_s25, 7 }
  0x18   : > { %615 = vperm.xlu1 (!%p475_p9), %3747, %v544_v3   ;;  %607 = vperm.xlu0 (!%p475_p9), %3746, %v542_v4  }
  0x1a   : > { %s5109_s28 = smov (!%p528_p10, %s3174_s28), 7  ;;  %3402 = vmatpush3.bf16.msra.mxu0 %v3842_v13 }
  0x1b   : > { %s3175_s18 = sshll.u32 %s5109_s28, 3  ;;  %3403 = vmatprep.subr.bf16.mxu0 %v3843_v14  ;;  %s5089_s28 = smov 64  }
  0x1c   : > { %s531_s17 = scalar_lea.vmem %s5098_s26, %s3175_s18  ;;  %3749 = vset.pattern.permute.xlu1 %v4002_v5  ;;  %3748 = vset.pattern.permute.xlu0 %v4002_v5  ;;  %s5085_s26 = smov 96  }
  0x1d   : > { %v4159_v6 = vld [vmem:[%s531_s17 + $0x10] sm:$0xff]  ;;  %v4161_v7 = vld [vmem:[%s531_s17 + $0x18] sm:$0xff]  ;;  %v4163_v8 = vld [vmem:[%s531_s17] sm:$0xff]  ;;  %576 = vperm.xlu1 %3749, %v542_v4   ;;  %571 = vperm.xlu0 %3748, %v541_v1   ;;  %s534_s30 = scalar_select %p533_p11, %s4116_s25, 1 }
  0x1e   : > { %v4165_v9 = vld [vmem:[%s531_s17 + $0x8] sm:$0xff]  ;;  %v3755_v11 = vpack.i.bf16 %v4161_v7, %v4159_v6  ;;  %s5087_s17 = smov 32   ;;  %3404 = vmatpush3.bf16.msra.mxu0 %v3843_v14  ;;  %v595_v20 = vrot.slane %v4159_v6, 1  ;;  %v596_v21 = vrot.slane %v4161_v7, 1  ;;  %v593_v22 = vrot.slane %v4163_v8, 1 }
  0x1f   : > { %v3750_v12 = vpack.i.bf16 %v4165_v9, %v4163_v8  ;;  %3405 = vmatprep.subr.bf16.mxu0 %v3844_v15  ;;  %v594_v23 = vrot.slane %v4165_v9, 1  ;;  %v558_v42 = vrot.slane %v4163_v8, 7  ;;  %v559_v43 = vrot.slane %v4165_v9, 7  ;;  %s535_s19 = scalar_lea.vmem %s5065_s1, %s534_s30  ;;  %s526_s30 = scalar_lea.vmem [#allocation2], %s3173_s23 }
  0x20   : > { %v598_v26 = vsel %vm597_vm0, %v595_v20, %v596_v21  ;;  %v601_v28 = vsel %vm597_vm0, %v596_v21, %v593_v22  ;;  %v561_v44 = vrot.slane %v4161_v7, 7  ;;  %v560_v45 = vrot.slane %v4159_v6, 7 }
  0x21   : > { %581 = vperm.xlu1 %3749, %v543_v0   ;;  %586 = vperm.xlu0 %3748, %v544_v3   ;;  %v600_v27 = vsel %vm597_vm0, %v593_v22, %v594_v23  ;;  %v599_v29 = vsel %vm597_vm0, %v594_v23, %v595_v20  ;;  %v567_v46 = vsel %vm564_vm1, %v558_v42, %v559_v43  ;;  %v4005_v20 = vmov 0.0|0.0  }
  0x22   : > { %3406 = vmatpush3.bf16.msra.mxu0 %v3844_v15  ;;  %v568_v47 = vsel %vm564_vm1, %v561_v44, %v558_v42  ;;  %v566_v48 = vsel %vm564_vm1, %v559_v43, %v560_v45  ;;  %v565_v49 = vsel %vm564_vm1, %v560_v45, %v561_v44  ;;  %3637 = vmatprep.subr.bf16.mxu1 %v4005_v20  ;;  %v4007_v42 = vmov 0.0  }
  0x23   : > { %3407 = vmatprep.subr.bf16.mxu0 %v3845_v16  ;;  %3423 = vmatprep.mubr.msk.f32.mxu1 %vm4006_vm5, %v4007_v42 }
  0x25   : > { %3756 = vrot.lane.b32.xlu0 %v3755_v11, %s5087_s17  ;;  %3751 = vrot.lane.b32.xlu1 %v3750_v12, %s5087_s17 }
  0x26   : > { %3840 = vset.pattern.permute.xlu0 %v4001_v2  ;;  %3408 = vmatpush3.bf16.msra.mxu0 %v3845_v16  ;;  %v4256_v16 = vsub.s32 0, %v4188_v18 }
  0x27   : > { %3409 = vmatprep.subr.bf16.mxu0 %v3846_v19 }
  0x2a   : > { %3410 = vmatpush3.bf16.msra.mxu0 %v3846_v19  ;;  %v682_v19 = vrot.slane %v4261_v17, %v4256_v16 }
  0x93   : > { %v4198_v24 = vpop.permute.xlu1 %611  ;;  %v4200_v25 = vpop.permute.xlu0 %603 }
  0x94   : > { %v620_v32 = vmul.f32 %v4198_v24, %v598_v26  ;;  %v618_v33 = vmul.f32 %v4200_v25, %v600_v27 }
  0x97   : > { %v4210_v30 = vpop.permute.xlu1 %615  ;;  %v4212_v31 = vpop.permute.xlu0 %607 }
  0x98   : > { %v621_v34 = vmul.f32 %v4210_v30, %v601_v28  ;;  %v619_v35 = vmul.f32 %v4212_v31, %v599_v29 }
  0x9a   : > { %v3765_v36 = vpack.i.bf16 %v621_v34, %v620_v32  ;;  %v3760_v37 = vpack.i.bf16 %v619_v35, %v618_v33 }
  0x9c   : > { %3766 = vrot.lane.b32.xlu0 %v3765_v36, %s5089_s28  ;;  %3761 = vrot.lane.b32.xlu1 %v3760_v37, %s5089_s28  ;;  %v4220_v38 = vpop.permute.xlu1 %576  ;;  %v4222_v39 = vpop.permute.xlu0 %571 }
  0x9d   : > { %v590_v52 = vmul.f32 %v4220_v38, %v567_v46  ;;  %v589_v53 = vmul.f32 %v4222_v39, %v568_v47 }
  0xa0   : > { %v4224_v40 = vpop.permute.xlu1 %581  ;;  %v4226_v41 = vpop.permute.xlu0 %586 }
  0xa1   : > { %v591_v54 = vmul.f32 %v4224_v40, %v566_v48  ;;  %v592_v55 = vmul.f32 %v4226_v41, %v565_v49 }
  0xa4   : > { %v3757_v50 = vpop.permute.xlu0 %3756  ;;  %v3752_v51 = vpop.permute.xlu1 %3751 }
  0xa5   : > { %v3759_v56 = vunpack.i.h.bf16 %v3757_v50  ;;  %v3758_v57 = vunpack.i.l.bf16 %v3757_v50  ;;  %v3754_v58 = vunpack.i.h.bf16 %v3752_v51  ;;  %v3753_v59 = vunpack.i.l.bf16 %v3752_v51 }
  0xa7   : > { %v657_v2 = vsel %vm654_vm2, %v591_v54, %v3758_v57  ;;  %v658_v3 = vsel %vm654_vm2, %v592_v55, %v3759_v56  ;;  %v655_v4 = vsel %vm654_vm2, %v589_v53, %v3753_v59  ;;  %v656_v5 = vsel %vm654_vm2, %v590_v52, %v3754_v58  ;;  %v550_v55 = vld [vmem:[%s5069_s5] sm:$0xff]  ;;  %v551_v56 = vld [vmem:[%s5069_s5 + $0x8] sm:$0xff] }
  0xa8   : > { %v4304_v58 = vld [vmem:[%s5067_s3] sm:$0xf]  ;;  %v4306_v59 = vpack.c.bf16 %v551_v56, %v550_v55  ;;  %v3848_v55 = vld [vmem:[%s5072_s8 + $0x38] sm:$0xff]  }
  0xa9   : > { %v3849_v56 = vld [vmem:[%s5072_s8 + $0x40] sm:$0xff]  }
 0x10e   : > { %v3767_v60 = vpop.permute.xlu0 %3766  ;;  %v3762_v61 = vpop.permute.xlu1 %3761 }
 0x10f   : > { %v3769_v62 = vunpack.i.h.bf16 %v3767_v60  ;;  %v3768_v63 = vunpack.i.l.bf16 %v3767_v60  ;;  %v3764_v0 = vunpack.i.h.bf16 %v3762_v61  ;;  %v3763_v1 = vunpack.i.l.bf16 %v3762_v61  ;;  %v552_v60 = vld [vmem:[%s5069_s5 + $0x10] sm:$0xff]  ;;  %v553_v61 = vld [vmem:[%s5069_s5 + $0x18] sm:$0xff] }
 0x111   : > { %v663_v10 = vsel %vm659_vm3, %v658_v3, %v3769_v62  ;;  %v662_v11 = vsel %vm659_vm3, %v657_v2, %v3768_v63  ;;  %v660_v12 = vsel %vm659_vm3, %v655_v4, %v3763_v1  ;;  %v661_v13 = vsel %vm659_vm3, %v656_v5, %v3764_v0  ;;  %v554_v63 = vld [vmem:[%s5069_s5 + $0x20] sm:$0xff]  ;;  %v555_v0 = vld [vmem:[%s5069_s5 + $0x28] sm:$0xff]  ;;  %v556_v2 = vld [vmem:[%s5069_s5 + $0x30] sm:$0xff] }
 0x112   : > { %v664_v14 = vpack.c.bf16 %v661_v13, %v660_v12  ;;  %v665_v15 = vpack.c.bf16 %v663_v10, %v662_v11  ;;  %v4318_v62 = vpack.c.bf16 %v553_v61, %v552_v60  ;;  %v4330_v1 = vpack.c.bf16 %v555_v0, %v554_v63  ;;  %v557_v3 = vld [vmem:[%s5069_s5 + $0x38] sm:$0xff] }
 0x113   : > { %v4340_v4 = vpack.c.bf16 %v557_v3, %v556_v2  ;;  %v4346_v11 = vsub.s32 1, %v4188_v18 }
 0x114   : > { %3411 = vmatprep.mubr.msk.bf16.mxu0 %vm719_vm4, %v664_v14 }
 0x115   : > { %3412 = vmatmul.mubr.msk.bf16.vlgmr.msra.gmra.mrb[0].mxu0 %vm719_vm4, %v665_v15  ;;  %v957_v12 = vrot.slane %v4261_v17, %v4346_v11 }
 0x1e8   : > { %v3413_v21 = vpop.f32.mrb[0].mxu0 }
 0x1e9   : > { %v4266_v22 = vadd.f32 %v3413_v21, %v682_v19  ;;  %v760_v23 = vpop.f32.mrb[1].mxu0 }
 0x1ea   : > { %v4268_v26 = vadd.f32 %v760_v23, %v682_v19  ;;  %v3414_v27 = vpop.f32.mrb[2].mxu0 }
 0x1eb   : > { %v4270_v28 = vadd.f32 %v3414_v27, %v682_v19  ;;  %v763_v29 = vpop.f32.mrb[3].mxu0  ;;  %v777_v33 = vmul.f32 %v4266_v22, %v4266_v22 }
 0x1ec   : > { %v4272_v32 = vadd.f32 %v763_v29, %v682_v19  ;;  %v775_v35 = vmul.f32 %v4268_v26, %v4268_v26 }
 0x1ed   : > { %v778_v34 = vmul.f32 %v4270_v28, %v4270_v28 }
 0x1ee   : > { %v776_v36 = vmul.f32 %v4272_v32, %v4272_v32 }
 0x1ef   : > { %v3775_v37 = vpack.i.bf16 %v778_v34, %v777_v33 }
 0x1f0   : > { %v3770_v43 = vpack.i.bf16 %v776_v36, %v775_v35  ;;  %v4356_v35 = vld [vmem:[%s5068_s4] sm:$0xff]  ;;  %v4361_v36 = vsub.s32 2, %v4188_v18 }
 0x1f1   : > { %3776 = vrot.lane.b32.xlu0 %v3775_v37, %s5087_s17 }
 0x1f2   : > { %3771 = vrot.lane.b32.xlu1 %v3770_v43, %s5087_s17  ;;  %v971_v37 = vrot.slane %v4261_v17, %v4361_v36  ;;  %v4376_v17 = vld [vmem:[%s5068_s4 + $0x10] sm:$0xff] }
 0x1f5   : > { %959 = vrot.lane.b32.xlu0 %v957_v12, %s5087_s17 }
 0x263   : > { %v3777_v44 = vpop.permute.xlu0 %3776 }
 0x264   : > { %v3772_v45 = vpop.permute.xlu1 %3771  ;;  %v3779_v46 = vunpack.i.h.bf16 %v3777_v44  ;;  %v3778_v47 = vunpack.i.l.bf16 %v3777_v44 }
 0x265   : > { %v3774_v48 = vunpack.i.h.bf16 %v3772_v45  ;;  %v3773_v49 = vunpack.i.l.bf16 %v3772_v45 }
 0x266   : > { %v797_v53 = vsel %vm654_vm2, %v4266_v22, %v3778_v47  ;;  %v798_v54 = vsel %vm654_vm2, %v4270_v28, %v3779_v46 }
 0x267   : > { %v795_v50 = vsel %vm654_vm2, %v4268_v26, %v3773_v49  ;;  %v796_v51 = vsel %vm654_vm2, %v4272_v32, %v3774_v48  ;;  %v3641_v57 = vpack.c.bf16 %v798_v54, %v797_v53  ;;  %v960_v29 = vpop.permute.xlu0 %959  ;;  %v4370_v48 = vld [vmem:[%s5068_s4 + $0x8] sm:$0xff]  ;;  %v4387_v49 = vld [vmem:[%s5068_s4 + $0x18] sm:$0xff]  ;;  %v3847_v54 = vld [vmem:[%s5072_s8 + $0x30] sm:$0xff]  }
 0x268   : > { %v3638_v52 = vpack.c.bf16 %v796_v51, %v795_v50  ;;  %3453 = vmatprep.subr.bf16.mxu0 %v3847_v54 }
 0x269   : > { %3454 = vmatpush3.bf16.msra.mxu0 %v3847_v54 }
 0x26a   : > { %3639 = vmatpush3.bf16.msra.mxu1 %v3638_v52  ;;  %3455 = vmatprep.subr.bf16.mxu0 %v3848_v55 }
 0x26b   : > { %3640 = vmatprep.subr.bf16.mxu1 %v4005_v20 }
 0x26d   : > { %3456 = vmatpush3.bf16.msra.mxu0 %v3848_v55 }
 0x26e   : > { %3642 = vmatpush3.bf16.msra.mxu1 %v3641_v57  ;;  %3457 = vmatprep.subr.bf16.mxu0 %v3849_v56 }
 0x26f   : > { %3643 = vmatprep.subr.bf16.mxu1 %v4005_v20 }
 0x271   : > { %3424 = vmatmul.mubr.msk.f32.vlgmr.msra.gmra.mrb[0].mxu1 %vm654_vm2, %v4304_v58  ;;  %3458 = vmatpush3.bf16.msra.mxu0 %v3849_v56 }
 0x272   : > { %3645 = vmatpush3.bf16.msra.mxu1 %v4306_v59  ;;  %3442 = vmatprep.mubr.msk.f32.mxu1 %vm4006_vm5, %v4007_v42 }
 0x273   : > { %3646 = vmatprep.subr.bf16.mxu1 %v4005_v20 }
 0x276   : > { %3648 = vmatpush3.bf16.msra.mxu1 %v4318_v62 }
 0x277   : > { %3649 = vmatprep.subr.bf16.mxu1 %v4005_v20 }
 0x27a   : > { %3651 = vmatpush3.bf16.msra.mxu1 %v4330_v1 }
 0x27b   : > { %3652 = vmatprep.subr.bf16.mxu1 %v4005_v20 }
 0x27e   : > { %3654 = vmatpush3.bf16.msra.mxu1 %v4340_v4 }
 0x344   : > { %v868_v5 = vpop.f32.mrb[0].mxu1 }
 0x345   : > { %v3425_v10 = vpop.f32.mrb[1].mxu1  ;;  %3443 = vmatmul.mubr.msk.f32.vlgmr.msra.gmra.mrb[2].mxu1 %vm659_vm3, %v868_v5 }
 0x346   : > { %3447 = vmatprep.mubr.msk.f32.mxu1 %vm978_vm6, %v4356_v35 }
 0x418   : > { %v941_v13 = vpop.f32.mrb[2].mxu1 }
 0x419   : > { %v945_v14 = vmul.f32 %v941_v13, %v941_v13  ;;  %v3444_v15 = vpop.f32.mrb[3].mxu1 }
 0x41b   : > { %947 = vrot.lane.b32.xlu1 %v945_v14, %s5087_s17 }
 0x48d   : > { %v948_v19 = vpop.permute.xlu1 %947 }
 0x48e   : > { %v950_v21 = vsub.f32 %v941_v13, %v948_v19 }
 0x490   : > { %v951_v23 = vmax.f32 %v950_v21, 0.0 }
 0x492   : > { %v952_v27 = vadd.f32 1e-05, %v951_v23 }
 0x494   : > { %3875 = vrsqrt.f32 %v952_v27 }
 0x49e   : > { %v3876_v33 = vpop.eup %3875 }
 0x49f   : > { %v962_v34 = vmul.f32 %v3876_v33, %v960_v29 }
 0x4a1   : > { %964 = vrot.lane.b32.xlu1 %v962_v34, %s5085_s26 }
 0x513   : > { %v965_v43 = vpop.permute.xlu1 %964 }
 0x514   : > { %v967_v44 = vmul.f32 %v965_v43, %v941_v13 }
 0x516   : > { %v972_v45 = vsub.f32 %v971_v37, %v967_v44 }
 0x518   : > { %974 = vrot.lane.b32.xlu0 %v972_v45, %s5087_s17 }
 0x58a   : > { %v975_v46 = vpop.permute.xlu0 %974 }
 0x58b   : > { %v977_v47 = vsel %vm654_vm2, %v965_v43, %v975_v46 }
 0x58c   : > { %3445 = vmatprep.subr.msk.mxu1 %vm991_vm7, %v977_v47 }
 0x58d   : > { %3446 = vmatpush3.msk.msra.mxu1 %vm991_vm7, %v977_v47 }
 0x58e   : > { %3448 = vmatmul.mubr.msk.f32.vlgmr.msra.gmra.mrb[4].mxu1 %vm978_vm6, %v4370_v48  ;;  %3655 = vmatprep.subr.bf16.mxu1 %v4005_v20 }
 0x58f   : > { %3450 = vmatprep.mubr.msk.f32.mxu1 %vm978_vm6, %v4376_v17 }
 0x592   : > { %3451 = vmatmul.mubr.msk.f32.gmra.mrb[6].mxu1 %vm978_vm6, %v4387_v49 }
 0x593   : > { %3477 = vmatprep.mubr.msk.f32.mxu1 %vm4006_vm5, %v4007_v42 }
 0x661   : > { %v3449_v50 = vpop.f32.mrb[4].mxu1 }
 0x662   : > { %1090 = vrot.lane.b32.xlu0 %v3449_v50, %s5085_s26  ;;  %v1061_v51 = vpop.f32.mrb[5].mxu1  ;;  %v1081_v57 = vmul.f32 %v3449_v50, %v4272_v32 }
 0x663   : > { %1088 = vrot.lane.b32.xlu1 %v1061_v51, %s5085_s26  ;;  %v1080_v60 = vmul.f32 %v1061_v51, %v4268_v26 }
 0x665   : > { %v3452_v52 = vpop.f32.mrb[6].mxu1 }
 0x666   : > { %1094 = vrot.lane.b32.xlu0 %v3452_v52, %s5085_s26  ;;  %v1071_v53 = vpop.f32.mrb[7].mxu1  ;;  %v1083_v3 = vmul.f32 %v3452_v52, %v4270_v28  ;;  %v3850_v52 = vld [vmem:[%s5072_s8 + $0x48] sm:$0xff]  }
 0x667   : > { %1092 = vrot.lane.b32.xlu1 %v1071_v53, %s5085_s26  ;;  %v1082_v10 = vmul.f32 %v1071_v53, %v4266_v22  ;;  %3459 = vmatprep.subr.bf16.mxu0 %v3850_v52 }
 0x668   : > { %3460 = vmatpush3.bf16.msra.mxu0 %v3850_v52 }
 0x6d4   : > { %v1091_v61 = vpop.permute.xlu0 %1090 }
 0x6d5   : > { %v1101_v63 = vadd.f32 %v1091_v61, %v1081_v57  ;;  %v1089_v0 = vpop.permute.xlu1 %1088 }
 0x6d6   : > { %v1100_v2 = vadd.f32 %v1089_v0, %v1080_v60  ;;  %v3851_v0 = vld [vmem:[%s5072_s8 + $0x50] sm:$0xff]  }
 0x6d7   : > { %v1109_v5 = vmul.f32 0.044715, %v1101_v63  ;;  %v1105_v55 = vmul.f32 0.5, %v1101_v63  ;;  %3461 = vmatprep.subr.bf16.mxu0 %v3851_v0 }
 0x6d8   : > { %v1108_v12 = vmul.f32 0.044715, %v1100_v2  ;;  %v1095_v13 = vpop.permute.xlu0 %1094  ;;  %v1104_v57 = vmul.f32 0.5, %v1100_v2  ;;  %3462 = vmatpush3.bf16.msra.mxu0 %v3851_v0 }
 0x6d9   : > { %v1113_v14 = vmul.f32 %v1109_v5, %v1101_v63  ;;  %v1103_v15 = vadd.f32 %v1095_v13, %v1083_v3  ;;  %v1093_v19 = vpop.permute.xlu1 %1092 }
 0x6da   : > { %v1112_v21 = vmul.f32 %v1108_v12, %v1100_v2  ;;  %v1102_v23 = vadd.f32 %v1093_v19, %v1082_v10 }
 0x6db   : > { %v1117_v27 = vmul.f32 %v1113_v14, %v1101_v63  ;;  %v1111_v32 = vmul.f32 0.044715, %v1103_v15  ;;  %v1107_v12 = vmul.f32 0.5, %v1103_v15 }
 0x6dc   : > { %v1116_v29 = vmul.f32 %v1112_v21, %v1100_v2  ;;  %v1110_v26 = vmul.f32 0.044715, %v1102_v23  ;;  %v1106_v19 = vmul.f32 0.5, %v1102_v23 }
 0x6dd   : > { %v1121_v33 = vadd.f32 %v1117_v27, %v1101_v63  ;;  %v1115_v34 = vmul.f32 %v1111_v32, %v1103_v15  ;;  %v3852_v27 = vld [vmem:[%s5072_s8 + $0x58] sm:$0xff]  }
 0x6de   : > { %v1120_v37 = vadd.f32 %v1116_v29, %v1100_v2  ;;  %v1114_v43 = vmul.f32 %v1110_v26, %v1102_v23  ;;  %3463 = vmatprep.subr.bf16.mxu0 %v3852_v27 }
 0x6df   : > { %v1125_v44 = vmul.f32 0.7978846, %v1121_v33  ;;  %v1119_v28 = vmul.f32 %v1115_v34, %v1103_v15  ;;  %3464 = vmatpush3.bf16.msra.mxu0 %v3852_v27 }
 0x6e0   : > { %v1124_v45 = vmul.f32 0.7978846, %v1120_v37  ;;  %v1118_v46 = vmul.f32 %v1114_v43, %v1102_v23 }
 0x6e1   : > { %3877 = vtanh.f32 %v1125_v44  ;;  %v1123_v22 = vadd.f32 %v1119_v28, %v1103_v15 }
 0x6e2   : > { %3879 = vtanh.f32 %v1124_v45  ;;  %v1122_v47 = vadd.f32 %v1118_v46, %v1102_v23 }
 0x6e3   : > { %v1127_v50 = vmul.f32 0.7978846, %v1123_v22 }
 0x6e4   : > { %v1126_v51 = vmul.f32 0.7978846, %v1122_v47 }
 0x6e5   : > { %3881 = vtanh.f32 %v1127_v50 }
 0x6e6   : > { %3883 = vtanh.f32 %v1126_v51 }
 0x6eb   : > { %v3878_v53 = vpop.eup %3877 }
 0x6ec   : > { %v3880_v54 = vpop.eup %3879  ;;  %v1133_v56 = vadd.f32 1.0, %v3878_v53 }
 0x6ed   : > { %v1132_v60 = vadd.f32 1.0, %v3880_v54 }
 0x6ee   : > { %v1137_v61 = vmul.f32 %v1133_v56, %v1105_v55 }
 0x6ef   : > { %v3882_v3 = vpop.eup %3881  ;;  %v1136_v5 = vmul.f32 %v1132_v60, %v1104_v57 }
 0x6f0   : > { %v3884_v10 = vpop.eup %3883  ;;  %v4417_v13 = vadd.f32 %v1137_v61, %v4165_v9  ;;  %v1135_v14 = vadd.f32 1.0, %v3882_v3 }
 0x6f1   : > { %v4420_v63 = vadd.f32 %v1136_v5, %v4163_v8  ;;  %v1134_v2 = vadd.f32 1.0, %v3884_v10 }
 0x6f2   : > { %v1139_v21 = vmul.f32 %v1135_v14, %v1107_v12  ;;  %v1157_v29 = vrot.slane %v4417_v13, 1  ;;  %v1145_v51 = vrot.slane %v4417_v13, 7 }
 0x6f3   : > { %v3780_v32 = vpack.i.bf16 %v4417_v13, %v4420_v63  ;;  %v1138_v15 = vmul.f32 %v1134_v2, %v1106_v19  ;;  %v1156_v9 = vrot.slane %v4420_v63, 1  ;;  %v1144_v50 = vrot.slane %v4420_v63, 7 }
 0x6f4   : > { %v4430_v23 = vadd.f32 %v1139_v21, %v4161_v7 }
 0x6f5   : > { %3781 = vrot.lane.b32.xlu1 %v3780_v32, %s5087_s17  ;;  %v4434_v8 = vadd.f32 %v1138_v15, %v4159_v6  ;;  %v1162_v37 = vsel %vm597_vm0, %v1156_v9, %v1157_v29  ;;  %v1150_v56 = vsel %vm564_vm1, %v1144_v50, %v1145_v51 }
 0x6f6   : > { %v1159_v26 = vrot.slane %v4430_v23, 1  ;;  %v1164_v28 = vmul.f32 %v1162_v37, %v4200_v25  ;;  %v1147_v52 = vrot.slane %v4430_v23, 7  ;;  %v1153_v14 = vmul.f32 %v1150_v56, %v4220_v38 }
 0x6f7   : > { %v3785_v33 = vpack.i.bf16 %v4430_v23, %v4434_v8  ;;  %v1158_v34 = vrot.slane %v4434_v8, 1  ;;  %v1146_v53 = vrot.slane %v4434_v8, 7 }
 0x6f8   : > { %v1163_v7 = vsel %vm597_vm0, %v1159_v26, %v1156_v9  ;;  %v1151_v57 = vsel %vm564_vm1, %v1147_v52, %v1144_v50 }
 0x6f9   : > { %3786 = vrot.lane.b32.xlu0 %v3785_v33, %s5087_s17  ;;  %v1161_v6 = vsel %vm597_vm0, %v1157_v29, %v1158_v34  ;;  %v1160_v43 = vsel %vm597_vm0, %v1158_v34, %v1159_v26  ;;  %v1167_v44 = vmul.f32 %v1163_v7, %v4210_v30  ;;  %v1148_v60 = vsel %vm564_vm1, %v1146_v53, %v1147_v52 }
 0x6fa   : > { %v1165_v45 = vmul.f32 %v1161_v6, %v4212_v31  ;;  %v1166_v46 = vmul.f32 %v1160_v43, %v4198_v24  ;;  %v1149_v61 = vsel %vm564_vm1, %v1145_v51, %v1146_v53  ;;  %v1152_v12 = vmul.f32 %v1151_v57, %v4222_v39 }
 0x6fb   : > { %v1154_v19 = vmul.f32 %v1149_v61, %v4224_v40  ;;  %v1155_v2 = vmul.f32 %v1148_v60, %v4226_v41 }
 0x6fc   : > { %v3790_v22 = vpack.i.bf16 %v1165_v45, %v1164_v28  ;;  %v3795_v47 = vpack.i.bf16 %v1167_v44, %v1166_v46  ;;  %v4486_v46 = vld [vmem:[%s5073_s9 + $0x4] sm:$0x7] }
 0x6fe   : > { %3791 = vrot.lane.b32.xlu1 %v3790_v22, %s5089_s28  ;;  %3796 = vrot.lane.b32.xlu0 %v3795_v47, %s5089_s28  ;;  %v1228_v22 = vrot.slane %v4486_v46, %v4256_v16 }
 0x767   : > { %v3782_v54 = vpop.permute.xlu1 %3781 }
 0x768   : > { %v3784_v0 = vunpack.i.h.bf16 %v3782_v54  ;;  %v3783_v3 = vunpack.i.l.bf16 %v3782_v54 }
 0x76a   : > { %v1201_v26 = vsel %vm654_vm2, %v1153_v14, %v3784_v0  ;;  %v1200_v33 = vsel %vm654_vm2, %v1152_v12, %v3783_v3 }
 0x76b   : > { %v3787_v55 = vpop.permute.xlu0 %3786 }
 0x76c   : > { %v3789_v5 = vunpack.i.h.bf16 %v3787_v55  ;;  %v3788_v10 = vunpack.i.l.bf16 %v3787_v55 }
 0x76e   : > { %v1202_v34 = vsel %vm654_vm2, %v1154_v19, %v3788_v10  ;;  %v1203_v37 = vsel %vm654_vm2, %v1155_v2, %v3789_v5 }
 0x770   : > { %v3792_v21 = vpop.permute.xlu1 %3791  ;;  %v3797_v27 = vpop.permute.xlu0 %3796 }
 0x771   : > { %v3794_v32 = vunpack.i.h.bf16 %v3792_v21  ;;  %v3793_v15 = vunpack.i.l.bf16 %v3792_v21  ;;  %v3799_v9 = vunpack.i.h.bf16 %v3797_v27  ;;  %v3798_v29 = vunpack.i.l.bf16 %v3797_v27 }
 0x773   : > { %v1205_v7 = vsel %vm659_vm3, %v1201_v26, %v3794_v32  ;;  %v1204_v6 = vsel %vm659_vm3, %v1200_v33, %v3793_v15  ;;  %v1206_v43 = vsel %vm659_vm3, %v1202_v34, %v3798_v29  ;;  %v1207_v44 = vsel %vm659_vm3, %v1203_v37, %v3799_v9 }
 0x774   : > { %v1208_v28 = vpack.c.bf16 %v1205_v7, %v1204_v6  ;;  %v1209_v45 = vpack.c.bf16 %v1207_v44, %v1206_v43  ;;  %v1499_v37 = vrot.slane %v4486_v46, %v4346_v11 }
 0x776   : > { %3465 = vmatprep.mubr.msk.bf16.mxu0 %vm719_vm4, %v1208_v28 }
 0x777   : > { %3466 = vmatmul.mubr.msk.bf16.vlgmr.msra.gmra.mrb[4].mxu0 %vm719_vm4, %v1209_v45 }
 0x778   : > { %3501 = vmatprep.mubr.msk.f32.mxu0 %vm978_vm6, %v4356_v35 }
 0x84a   : > { %v3467_v47 = vpop.f32.mrb[4].mxu0 }
 0x84b   : > { %v4490_v50 = vadd.f32 %v3467_v47, %v1228_v22  ;;  %v1305_v51 = vpop.f32.mrb[5].mxu0 }
 0x84c   : > { %v4492_v52 = vadd.f32 %v1305_v51, %v1228_v22  ;;  %v3468_v53 = vpop.f32.mrb[6].mxu0 }
 0x84d   : > { %v4494_v54 = vadd.f32 %v3468_v53, %v1228_v22  ;;  %v1308_v55 = vpop.f32.mrb[7].mxu0  ;;  %v1322_v57 = vmul.f32 %v4490_v50, %v4490_v50 }
 0x84e   : > { %v4496_v56 = vadd.f32 %v1308_v55, %v1228_v22  ;;  %v1320_v61 = vmul.f32 %v4492_v52, %v4492_v52  ;;  %v1513_v55 = vrot.slane %v4486_v46, %v4361_v36 }
 0x84f   : > { %v1323_v60 = vmul.f32 %v4494_v54, %v4494_v54 }
 0x850   : > { %v1321_v0 = vmul.f32 %v4496_v56, %v4496_v56 }
 0x851   : > { %v3805_v3 = vpack.i.bf16 %v1323_v60, %v1322_v57 }
 0x852   : > { %v3800_v5 = vpack.i.bf16 %v1321_v0, %v1320_v61 }
 0x853   : > { %3806 = vrot.lane.b32.xlu0 %v3805_v3, %s5087_s17 }
 0x854   : > { %3801 = vrot.lane.b32.xlu1 %v3800_v5, %s5087_s17 }
 0x857   : > { %1501 = vrot.lane.b32.xlu0 %v1499_v37, %s5087_s17 }
 0x8c5   : > { %v3807_v10 = vpop.permute.xlu0 %3806 }
 0x8c6   : > { %v3802_v12 = vpop.permute.xlu1 %3801  ;;  %v3809_v14 = vunpack.i.h.bf16 %v3807_v10  ;;  %v3808_v19 = vunpack.i.l.bf16 %v3807_v10 }
 0x8c7   : > { %v3804_v2 = vunpack.i.h.bf16 %v3802_v12  ;;  %v3803_v21 = vunpack.i.l.bf16 %v3802_v12 }
 0x8c8   : > { %v1343_v9 = vsel %vm654_vm2, %v4494_v54, %v3809_v14  ;;  %v1342_v29 = vsel %vm654_vm2, %v4490_v50, %v3808_v19  ;;  %v3853_v14 = vld [vmem:[%s5072_s8 + $0x60] sm:$0xff]   ;;  %v3854_v19 = vld [vmem:[%s5072_s8 + $0x68] sm:$0xff]  }
 0x8c9   : > { %v1341_v27 = vsel %vm654_vm2, %v4496_v56, %v3804_v2  ;;  %v1340_v32 = vsel %vm654_vm2, %v4492_v52, %v3803_v21  ;;  %v3659_v26 = vpack.c.bf16 %v1343_v9, %v1342_v29  ;;  %v1502_v47 = vpop.permute.xlu0 %1501  ;;  %v3855_v2 = vld [vmem:[%s5072_s8 + $0x70] sm:$0xff]  }
 0x8ca   : > { %v3656_v15 = vpack.c.bf16 %v1341_v27, %v1340_v32 }
 0x8cc   : > { %3657 = vmatpush3.bf16.msra.mxu1 %v3656_v15 }
 0x8cd   : > { %3658 = vmatprep.subr.bf16.mxu1 %v4005_v20 }
 0x8d0   : > { %3660 = vmatpush3.bf16.msra.mxu1 %v3659_v26 }
 0x8d1   : > { %3661 = vmatprep.subr.bf16.mxu1 %v4005_v20 }
 0x8d3   : > { %3478 = vmatmul.mubr.msk.f32.vlgmr.msra.gmra.mrb[8].mxu1 %vm654_vm2, %v4304_v58 }
 0x8d4   : > { %3663 = vmatpush3.bf16.msra.mxu1 %v4306_v59  ;;  %3496 = vmatprep.mubr.msk.f32.mxu1 %vm4006_vm5, %v4007_v42 }
 0x8d5   : > { %3664 = vmatprep.subr.bf16.mxu1 %v4005_v20 }
 0x8d8   : > { %3666 = vmatpush3.bf16.msra.mxu1 %v4318_v62 }
 0x8d9   : > { %3667 = vmatprep.subr.bf16.mxu1 %v4005_v20 }
 0x8dc   : > { %3669 = vmatpush3.bf16.msra.mxu1 %v4330_v1 }
 0x8dd   : > { %3670 = vmatprep.subr.bf16.mxu1 %v4005_v20 }
 0x8e0   : > { %3672 = vmatpush3.bf16.msra.mxu1 %v4340_v4 }
 0x8e1   : > { %3507 = vmatprep.subr.bf16.mxu1 %v3853_v14 }
 0x9a6   : > { %v1410_v33 = vpop.f32.mrb[8].mxu1 }
 0x9a7   : > { %v3479_v34 = vpop.f32.mrb[9].mxu1  ;;  %3497 = vmatmul.mubr.msk.f32.vlgmr.msra.gmra.mrb[10].mxu1 %vm659_vm3, %v1410_v33 }
 0x9a8   : > { %3508 = vmatpush3.bf16.msra.mxu1 %v3853_v14 }
 0x9a9   : > { %3509 = vmatprep.subr.bf16.mxu1 %v3854_v19 }
 0x9ac   : > { %3510 = vmatpush3.bf16.msra.mxu1 %v3854_v19 }
 0x9ad   : > { %3511 = vmatprep.subr.bf16.mxu1 %v3855_v2 }
 0x9b0   : > { %3512 = vmatpush3.bf16.msra.mxu1 %v3855_v2 }
 0xa7a   : > { %v1483_v7 = vpop.f32.mrb[10].mxu1 }
 0xa7b   : > { %v1487_v6 = vmul.f32 %v1483_v7, %v1483_v7  ;;  %v3498_v43 = vpop.f32.mrb[11].mxu1 }
 0xa7d   : > { %1489 = vrot.lane.b32.xlu1 %v1487_v6, %s5087_s17 }
 0xaef   : > { %v1490_v44 = vpop.permute.xlu1 %1489 }
 0xaf0   : > { %v1492_v28 = vsub.f32 %v1483_v7, %v1490_v44 }
 0xaf2   : > { %v1493_v45 = vmax.f32 %v1492_v28, 0.0 }
 0xaf4   : > { %v1494_v22 = vadd.f32 1e-05, %v1493_v45 }
 0xaf6   : > { %3885 = vrsqrt.f32 %v1494_v22 }
 0xb00   : > { %v3886_v51 = vpop.eup %3885 }
 0xb01   : > { %v1504_v53 = vmul.f32 %v3886_v51, %v1502_v47 }
 0xb03   : > { %1506 = vrot.lane.b32.xlu1 %v1504_v53, %s5085_s26 }
 0xb75   : > { %v1507_v57 = vpop.permute.xlu1 %1506 }
 0xb76   : > { %v1509_v60 = vmul.f32 %v1507_v57, %v1483_v7 }
 0xb78   : > { %v1514_v61 = vsub.f32 %v1513_v55, %v1509_v60 }
 0xb7a   : > { %1516 = vrot.lane.b32.xlu0 %v1514_v61, %s5087_s17 }
 0xbec   : > { %v1517_v0 = vpop.permute.xlu0 %1516 }
 0xbed   : > { %v1519_v3 = vsel %vm654_vm2, %v1507_v57, %v1517_v0 }
 0xbee   : > { %3499 = vmatprep.subr.msk.mxu0 %vm991_vm7, %v1519_v3 }
 0xbef   : > { %3500 = vmatpush3.msk.msra.mxu0 %vm991_vm7, %v1519_v3 }
 0xbf0   : > { %3502 = vmatmul.mubr.msk.f32.vlgmr.msra.gmra.mrb[8].mxu0 %vm978_vm6, %v4370_v48  ;;  %3673 = vmatprep.subr.bf16.mxu0 %v4005_v20 }
 0xbf1   : > { %3504 = vmatprep.mubr.msk.f32.mxu0 %vm978_vm6, %v4376_v17 }
 0xbf4   : > { %3505 = vmatmul.mubr.msk.f32.gmra.mrb[10].mxu0 %vm978_vm6, %v4387_v49 }
 0xbf5   : > { %3531 = vmatprep.mubr.msk.f32.mxu0 %vm4006_vm5, %v4007_v42 }
 0xcc3   : > { %v3503_v46 = vpop.f32.mrb[8].mxu0 }
 0xcc4   : > { %1618 = vrot.lane.b32.xlu0 %v3503_v46, %s5085_s26  ;;  %v1589_v5 = vpop.f32.mrb[9].mxu0  ;;  %v1609_v21 = vmul.f32 %v3503_v46, %v4496_v56 }
 0xcc5   : > { %1616 = vrot.lane.b32.xlu1 %v1589_v5, %s5085_s26  ;;  %v1608_v27 = vmul.f32 %v1589_v5, %v4492_v52 }
 0xcc7   : > { %v3506_v10 = vpop.f32.mrb[10].mxu0 }
 0xcc8   : > { %1622 = vrot.lane.b32.xlu0 %v3506_v10, %s5085_s26  ;;  %v1599_v12 = vpop.f32.mrb[11].mxu0  ;;  %v1611_v26 = vmul.f32 %v3506_v10, %v4494_v54  ;;  %v3856_v10 = vld [vmem:[%s5072_s8 + $0x78] sm:$0xff]  }
 0xcc9   : > { %1620 = vrot.lane.b32.xlu1 %v1599_v12, %s5085_s26  ;;  %v1610_v34 = vmul.f32 %v1599_v12, %v4490_v50  ;;  %3513 = vmatprep.subr.bf16.mxu1 %v3856_v10 }
 0xcca   : > { %3514 = vmatpush3.bf16.msra.mxu1 %v3856_v10 }
 0xd36   : > { %v1619_v32 = vpop.permute.xlu0 %1618 }
 0xd37   : > { %v1629_v15 = vadd.f32 %v1619_v32, %v1609_v21  ;;  %v1617_v9 = vpop.permute.xlu1 %1616 }
 0xd38   : > { %v1628_v29 = vadd.f32 %v1617_v9, %v1608_v27  ;;  %v3857_v9 = vld [vmem:[%s5072_s8 + $0x80] sm:$0xff]  }
 0xd39   : > { %v1637_v33 = vmul.f32 0.044715, %v1629_v15  ;;  %v1633_v19 = vmul.f32 0.5, %v1629_v15  ;;  %3515 = vmatprep.subr.bf16.mxu1 %v3857_v9 }
 0xd3a   : > { %v1636_v37 = vmul.f32 0.044715, %v1628_v29  ;;  %v1623_v7 = vpop.permute.xlu0 %1622  ;;  %v1632_v21 = vmul.f32 0.5, %v1628_v29  ;;  %3516 = vmatpush3.bf16.msra.mxu1 %v3857_v9 }
 0xd3b   : > { %v1641_v6 = vmul.f32 %v1637_v33, %v1629_v15  ;;  %v1631_v43 = vadd.f32 %v1623_v7, %v1611_v26  ;;  %v1621_v44 = vpop.permute.xlu1 %1620 }
 0xd3c   : > { %v1640_v28 = vmul.f32 %v1636_v37, %v1628_v29  ;;  %v1630_v45 = vadd.f32 %v1621_v44, %v1610_v34 }
 0xd3d   : > { %v1645_v22 = vmul.f32 %v1641_v6, %v1629_v15  ;;  %v1639_v56 = vmul.f32 0.044715, %v1631_v43  ;;  %v1635_v37 = vmul.f32 0.5, %v1631_v43 }
 0xd3e   : > { %v1644_v47 = vmul.f32 %v1640_v28, %v1628_v29  ;;  %v1638_v52 = vmul.f32 0.044715, %v1630_v45 }
 0xd3f   : > { %v1649_v51 = vadd.f32 %v1645_v22, %v1629_v15  ;;  %v1643_v53 = vmul.f32 %v1639_v56, %v1631_v43  ;;  %v1634_v15 = vmul.f32 0.5, %v1630_v45  ;;  %v3858_v22 = vld [vmem:[%s5072_s8 + $0x88] sm:$0xff]  }
 0xd40   : > { %v1648_v55 = vadd.f32 %v1644_v47, %v1628_v29  ;;  %v1642_v57 = vmul.f32 %v1638_v52, %v1630_v45  ;;  %3517 = vmatprep.subr.bf16.mxu1 %v3858_v22 }
 0xd41   : > { %v1653_v60 = vmul.f32 0.7978846, %v1649_v51  ;;  %v1647_v54 = vmul.f32 %v1643_v53, %v1631_v43  ;;  %3518 = vmatpush3.bf16.msra.mxu1 %v3858_v22 }
 0xd42   : > { %v1652_v61 = vmul.f32 0.7978846, %v1648_v55  ;;  %v1646_v0 = vmul.f32 %v1642_v57, %v1630_v45 }
 0xd43   : > { %3887 = vtanh.f32 %v1653_v60  ;;  %v1651_v50 = vadd.f32 %v1647_v54, %v1631_v43 }
 0xd44   : > { %3889 = vtanh.f32 %v1652_v61  ;;  %v1650_v3 = vadd.f32 %v1646_v0, %v1630_v45 }
 0xd45   : > { %v1655_v46 = vmul.f32 0.7978846, %v1651_v50 }
 0xd46   : > { %v1654_v5 = vmul.f32 0.7978846, %v1650_v3 }
 0xd47   : > { %3891 = vtanh.f32 %v1655_v46 }
 0xd48   : > { %3893 = vtanh.f32 %v1654_v5 }
 0xd4d   : > { %v3888_v12 = vpop.eup %3887 }
 0xd4e   : > { %v3890_v14 = vpop.eup %3889  ;;  %v1661_v2 = vadd.f32 1.0, %v3888_v12 }
 0xd4f   : > { %v1660_v27 = vadd.f32 1.0, %v3890_v14 }
 0xd50   : > { %v1665_v32 = vmul.f32 %v1661_v2, %v1633_v19 }
 0xd51   : > { %v3892_v26 = vpop.eup %3891  ;;  %v1664_v33 = vmul.f32 %v1660_v27, %v1632_v21 }
 0xd52   : > { %v3894_v34 = vpop.eup %3893  ;;  %v4574_v7 = vadd.f32 %v1665_v32, %v4417_v13  ;;  %v1663_v6 = vadd.f32 1.0, %v3892_v26 }
 0xd53   : > { %v4577_v44 = vadd.f32 %v1664_v33, %v4420_v63  ;;  %v1662_v29 = vadd.f32 1.0, %v3894_v34 }
 0xd54   : > { %v1667_v28 = vmul.f32 %v1663_v6, %v1635_v37  ;;  %v1685_v47 = vrot.slane %v4574_v7, 1  ;;  %v1673_v5 = vrot.slane %v4574_v7, 7 }
 0xd55   : > { %v3810_v56 = vpack.i.bf16 %v4574_v7, %v4577_v44  ;;  %v1666_v43 = vmul.f32 %v1662_v29, %v1634_v15  ;;  %v1684_v13 = vrot.slane %v4577_v44, 1  ;;  %v1672_v46 = vrot.slane %v4577_v44, 7 }
 0xd56   : > { %v4587_v45 = vadd.f32 %v1667_v28, %v4430_v23 }
 0xd57   : > { %3811 = vrot.lane.b32.xlu1 %v3810_v56, %s5087_s17  ;;  %v4591_v63 = vadd.f32 %v1666_v43, %v4434_v8  ;;  %v1690_v55 = vsel %vm597_vm0, %v1684_v13, %v1685_v47 }
 0xd58   : > { %v1687_v52 = vrot.slane %v4587_v45, 1  ;;  %v1692_v54 = vmul.f32 %v1690_v55, %v4200_v25  ;;  %v1675_v10 = vrot.slane %v4587_v45, 7 }
 0xd59   : > { %v3815_v51 = vpack.i.bf16 %v4587_v45, %v4591_v63  ;;  %v1686_v53 = vrot.slane %v4591_v63, 1 }
 0xd5a   : > { %v1691_v23 = vsel %vm597_vm0, %v1687_v52, %v1684_v13 }
 0xd5b   : > { %3816 = vrot.lane.b32.xlu0 %v3815_v51, %s5087_s17  ;;  %v1689_v8 = vsel %vm597_vm0, %v1685_v47, %v1686_v53  ;;  %v1688_v57 = vsel %vm597_vm0, %v1686_v53, %v1687_v52  ;;  %v1695_v60 = vmul.f32 %v1691_v23, %v4210_v30  ;;  %v1674_v30 = vrot.slane %v4591_v63, 7  ;;  %v4641_v53 = vld [vmem:[%s5073_s9 + $0x8] sm:$0x7] }
 0xd5c   : > { %v1693_v61 = vmul.f32 %v1689_v8, %v4212_v31  ;;  %v1694_v0 = vmul.f32 %v1688_v57, %v4198_v24  ;;  %v1678_v31 = vsel %vm564_vm1, %v1672_v46, %v1673_v5  ;;  %v1679_v24 = vsel %vm564_vm1, %v1675_v10, %v1672_v46 }
 0xd5d   : > { %v1676_v14 = vsel %vm564_vm1, %v1674_v30, %v1675_v10  ;;  %v1677_v19 = vsel %vm564_vm1, %v1673_v5, %v1674_v30  ;;  %v1680_v9 = vmul.f32 %v1679_v24, %v4222_v39  ;;  %v1681_v26 = vmul.f32 %v1678_v31, %v4220_v38 }
 0xd5e   : > { %v3820_v50 = vpack.i.bf16 %v1693_v61, %v1692_v54  ;;  %v3825_v3 = vpack.i.bf16 %v1695_v60, %v1694_v0  ;;  %v1682_v33 = vmul.f32 %v1677_v19, %v4224_v40  ;;  %v1683_v34 = vmul.f32 %v1676_v14, %v4226_v41 }
 0xd5f   : > { %v1756_v55 = vrot.slane %v4641_v53, %v4256_v16 }
 0xd60   : > { %3821 = vrot.lane.b32.xlu1 %v3820_v50, %s5089_s28  ;;  %3826 = vrot.lane.b32.xlu0 %v3825_v3, %s5089_s28 }
 0xdc9   : > { %v3812_v12 = vpop.permute.xlu1 %3811 }
 0xdca   : > { %v3814_v2 = vunpack.i.h.bf16 %v3812_v12  ;;  %v3813_v21 = vunpack.i.l.bf16 %v3812_v12 }
 0xdcc   : > { %v1729_v56 = vsel %vm654_vm2, %v1681_v26, %v3814_v2  ;;  %v1728_v43 = vsel %vm654_vm2, %v1680_v9, %v3813_v21 }
 0xdcd   : > { %v3817_v25 = vpop.permute.xlu0 %3816 }
 0xdce   : > { %v3819_v27 = vunpack.i.h.bf16 %v3817_v25  ;;  %v3818_v32 = vunpack.i.l.bf16 %v3817_v25 }
 0xdd0   : > { %v1730_v13 = vsel %vm654_vm2, %v1682_v33, %v3818_v32  ;;  %v1731_v39 = vsel %vm654_vm2, %v1683_v34, %v3819_v27 }
 0xdd2   : > { %v3822_v37 = vpop.permute.xlu1 %3821  ;;  %v3827_v6 = vpop.permute.xlu0 %3826 }
 0xdd3   : > { %v3824_v15 = vunpack.i.h.bf16 %v3822_v37  ;;  %v3823_v29 = vunpack.i.l.bf16 %v3822_v37  ;;  %v3829_v28 = vunpack.i.h.bf16 %v3827_v6  ;;  %v3828_v22 = vunpack.i.l.bf16 %v3827_v6 }
 0xdd5   : > { %v1733_v38 = vsel %vm659_vm3, %v1729_v56, %v3824_v15  ;;  %v1732_v40 = vsel %vm659_vm3, %v1728_v43, %v3823_v29  ;;  %v1734_v41 = vsel %vm659_vm3, %v1730_v13, %v3828_v22  ;;  %v1735_v47 = vsel %vm659_vm3, %v1731_v39, %v3829_v28 }
 0xdd6   : > { %v1736_v52 = vpack.c.bf16 %v1733_v38, %v1732_v40  ;;  %v1737_v51 = vpack.c.bf16 %v1735_v47, %v1734_v41 }
 0xdd8   : > { %3519 = vmatprep.mubr.msk.bf16.mxu1 %vm719_vm4, %v1736_v52  ;;  %v4730_v52 = vld [vmem:[%s5070_s6] sm:$0xff]  }
 0xdd9   : > { %3520 = vmatmul.mubr.msk.bf16.vlgmr.msra.gmra.mrb[12].mxu1 %vm719_vm4, %v1737_v51  ;;  %v4739_v51 = vld [vmem:[%s5070_s6 + $0x18] sm:$0xff]  }
 0xeac   : > { %v3521_v23 = vpop.f32.mrb[12].mxu1 }
 0xead   : > { %v4645_v8 = vadd.f32 %v3521_v23, %v1756_v55  ;;  %v1833_v57 = vpop.f32.mrb[13].mxu1  ;;  %v4758_v23 = vld [vmem:[%s5070_s6 + $0x20] sm:$0xff]  }
 0xeae   : > { %v4647_v60 = vadd.f32 %v1833_v57, %v1756_v55  ;;  %v3522_v54 = vpop.f32.mrb[14].mxu1  ;;  %v4767_v57 = vld [vmem:[%s5070_s6 + $0x38] sm:$0xff]  }
 0xeaf   : > { %v4649_v61 = vadd.f32 %v3522_v54, %v1756_v55  ;;  %v1836_v0 = vpop.f32.mrb[15].mxu1  ;;  %v1850_v3 = vmul.f32 %v4645_v8, %v4645_v8  ;;  %v4772_v54 = vld [vmem:[%s5070_s6 + $0x30] sm:$0xff]  }
 0xeb0   : > { %v4651_v50 = vadd.f32 %v1836_v0, %v1756_v55  ;;  %v1848_v5 = vmul.f32 %v4647_v60, %v4647_v60  ;;  %v4753_v55 = vld [vmem:[%s5070_s6 + $0x28] sm:$0xff]  }
 0xeb1   : > { %v1851_v46 = vmul.f32 %v4649_v61, %v4649_v61 }
 0xeb2   : > { %v1849_v10 = vmul.f32 %v4651_v50, %v4651_v50 }
 0xeb3   : > { %v3835_v30 = vpack.i.bf16 %v1851_v46, %v1850_v3 }
 0xeb4   : > { %v3830_v12 = vpack.i.bf16 %v1849_v10, %v1848_v5 }
 0xeb5   : > { %3836 = vrot.lane.b32.xlu0 %v3835_v30, %s5087_s17 }
 0xeb6   : > { %3831 = vrot.lane.b32.xlu1 %v3830_v12, %s5087_s17 }
 0xf27   : > { %v3837_v25 = vpop.permute.xlu0 %3836 }
 0xf28   : > { %v3832_v31 = vpop.permute.xlu1 %3831  ;;  %v3839_v24 = vunpack.i.h.bf16 %v3837_v25  ;;  %v3838_v14 = vunpack.i.l.bf16 %v3837_v25 }
 0xf29   : > { %v3834_v19 = vunpack.i.h.bf16 %v3832_v31  ;;  %v3833_v2 = vunpack.i.l.bf16 %v3832_v31 }
 0xf2a   : > { %v1871_v9 = vsel %vm654_vm2, %v4649_v61, %v3839_v24  ;;  %v1870_v26 = vsel %vm654_vm2, %v4645_v8, %v3838_v14 }
 0xf2b   : > { %v1869_v21 = vsel %vm654_vm2, %v4651_v50, %v3834_v19  ;;  %v1868_v27 = vsel %vm654_vm2, %v4647_v60, %v3833_v2  ;;  %v3677_v33 = vpack.c.bf16 %v1871_v9, %v1870_v26 }
 0xf2c   : > { %v3674_v32 = vpack.c.bf16 %v1869_v21, %v1868_v27 }
 0xf2e   : > { %3675 = vmatpush3.bf16.msra.mxu0 %v3674_v32 }
 0xf2f   : > { %3676 = vmatprep.subr.bf16.mxu0 %v4005_v20 }
 0xf32   : > { %3678 = vmatpush3.bf16.msra.mxu0 %v3677_v33 }
 0xf33   : > { %3679 = vmatprep.subr.bf16.mxu0 %v4005_v20 }
 0xf35   : > { %3532 = vmatmul.mubr.msk.f32.vlgmr.msra.gmra.mrb[12].mxu0 %vm654_vm2, %v4304_v58 }
 0xf36   : > { %3681 = vmatpush3.bf16.msra.mxu0 %v4306_v59  ;;  %3550 = vmatprep.mubr.msk.f32.mxu0 %vm4006_vm5, %v4007_v42  ;;  %v2027_v42 = vrot.slane %v4641_v53, %v4346_v11 }
 0xf37   : > { %3682 = vmatprep.subr.bf16.mxu0 %v4005_v20 }
 0xf38   : > { %2029 = vrot.lane.b32.xlu0 %v2027_v42, %s5087_s17 }
 0xf3a   : > { %3684 = vmatpush3.bf16.msra.mxu0 %v4318_v62 }
 0xf3b   : > { %3685 = vmatprep.subr.bf16.mxu0 %v4005_v20 }
 0xf3e   : > { %3687 = vmatpush3.bf16.msra.mxu0 %v4330_v1 }
 0xf3f   : > { %3688 = vmatprep.subr.bf16.mxu0 %v4005_v20 }
 0xf42   : > { %3690 = vmatpush3.bf16.msra.mxu0 %v4340_v4 }
 0xfaa   : > { %v2030_v15 = vpop.permute.xlu0 %2029 }
0x1008   : > { %v1938_v34 = vpop.f32.mrb[12].mxu0 }
0x1009   : > { %3551 = vmatmul.mubr.msk.f32.vlgmr.msra.gmra.mrb[14].mxu0 %vm659_vm3, %v1938_v34  ;;  %v3533_v58 = vpop.f32.mrb[13].mxu0 }
0x100a   : > { %3555 = vmatprep.mubr.msk.f32.mxu0 %vm978_vm6, %v4356_v35  ;;  %v2041_v35 = vrot.slane %v4641_v53, %v4361_v36  ;;  %v4744_v53 = vld [vmem:[%s5070_s6 + $0x10] sm:$0xff]  }
0x10dc   : > { %v2011_v59 = vpop.f32.mrb[14].mxu0 }
0x10dd   : > { %v2015_v62 = vmul.f32 %v2011_v59, %v2011_v59  ;;  %v3552_v37 = vpop.f32.mrb[15].mxu0 }
0x10df   : > { %2017 = vrot.lane.b32.xlu1 %v2015_v62, %s5087_s17 }
0x1151   : > { %v2018_v20 = vpop.permute.xlu1 %2017 }
0x1152   : > { %v2020_v1 = vsub.f32 %v2011_v59, %v2018_v20 }
0x1154   : > { %v2021_v4 = vmax.f32 %v2020_v1, 0.0 }
0x1156   : > { %v2022_v6 = vadd.f32 1e-05, %v2021_v4 }
0x1158   : > { %3895 = vrsqrt.f32 %v2022_v6 }
0x1162   : > { %v3896_v29 = vpop.eup %3895 }
0x1163   : > { %v2032_v28 = vmul.f32 %v3896_v29, %v2030_v15 }
0x1165   : > { %2034 = vrot.lane.b32.xlu1 %v2032_v28, %s5085_s26 }
0x11d7   : > { %v2035_v22 = vpop.permute.xlu1 %2034 }
0x11d8   : > { %v2037_v56 = vmul.f32 %v2035_v22, %v2011_v59 }
0x11da   : > { %v2042_v43 = vsub.f32 %v2041_v35, %v2037_v56 }
0x11dc   : > { %2044 = vrot.lane.b32.xlu0 %v2042_v43, %s5087_s17 }
0x124e   : > { %v2045_v13 = vpop.permute.xlu0 %2044 }
0x124f   : > { %v2047_v39 = vsel %vm654_vm2, %v2035_v22, %v2045_v13 }
0x1250   : > { %3553 = vmatprep.subr.msk.mxu0 %vm991_vm7, %v2047_v39 }
0x1251   : > { %3554 = vmatpush3.msk.msra.mxu0 %vm991_vm7, %v2047_v39 }
0x1252   : > { %3556 = vmatmul.mubr.msk.f32.vlgmr.msra.gmra.mrb[16].mxu0 %vm978_vm6, %v4370_v48  ;;  %v4711_v48 = vld [vmem:[%s5074_s10] sm:$0xff]  }
0x1253   : > { %3558 = vmatprep.mubr.msk.f32.mxu0 %vm978_vm6, %v4376_v17  ;;  %v4716_v17 = vld [vmem:[%s5074_s10 + $0x8] sm:$0xff]   ;;  %3561 = vmatprep.subr.bf16.mxu1 %v4711_v48 }
0x1254   : > { %3562 = vmatpush3.bf16.msra.mxu1 %v4711_v48 }
0x1255   : > { %3563 = vmatprep.subr.bf16.mxu1 %v4716_v17 }
0x1256   : > { %3559 = vmatmul.mubr.msk.f32.gmra.mrb[18].mxu0 %vm978_vm6, %v4387_v49  ;;  %v4725_v49 = vld [vmem:[%s5070_s6 + $0x8] sm:$0xff]  }
0x1258   : > { %3564 = vmatpush3.bf16.msra.mxu1 %v4716_v17 }
0x1325   : > { %v3557_v38 = vpop.f32.mrb[16].mxu0 }
0x1326   : > { %2146 = vrot.lane.b32.xlu0 %v3557_v38, %s5085_s26  ;;  %v2117_v40 = vpop.f32.mrb[17].mxu0  ;;  %v2137_v0 = vmul.f32 %v3557_v38, %v4651_v50 }
0x1327   : > { %2144 = vrot.lane.b32.xlu1 %v2117_v40, %s5085_s26  ;;  %v2136_v3 = vmul.f32 %v2117_v40, %v4647_v60 }
0x1329   : > { %v3560_v41 = vpop.f32.mrb[18].mxu0 }
0x132a   : > { %2150 = vrot.lane.b32.xlu0 %v3560_v41, %s5085_s26  ;;  %v2127_v47 = vpop.f32.mrb[19].mxu0  ;;  %v2139_v12 = vmul.f32 %v3560_v41, %v4649_v61 }
0x132b   : > { %2148 = vrot.lane.b32.xlu1 %v2127_v47, %s5085_s26  ;;  %v2138_v31 = vmul.f32 %v2127_v47, %v4645_v8 }
0x132e   : > { %2351 = vrot.lane.b32.xlu0 %v4725_v49, %s5087_s17 }
0x132f   : > { %2349 = vrot.lane.b32.xlu1 %v4730_v52, %s5087_s17 }
0x1332   : > { %2355 = vrot.lane.b32.xlu0 %v4739_v51, %s5087_s17 }
0x1333   : > { %2353 = vrot.lane.b32.xlu1 %v4744_v53, %s5087_s17 }
0x1336   : > { %2359 = vrot.lane.b32.xlu0 %v4753_v55, %s5087_s17 }
0x1337   : > { %2357 = vrot.lane.b32.xlu1 %v4758_v23, %s5087_s17 }
0x133a   : > { %2363 = vrot.lane.b32.xlu0 %v4767_v57, %s5087_s17 }
0x133b   : > { %2361 = vrot.lane.b32.xlu1 %v4772_v54, %s5087_s17  ;;  %s5099_s17 = smov 64  }
0x1398   : > { %v2147_v46 = vpop.permute.xlu0 %2146 }
0x1399   : > { %v2157_v5 = vadd.f32 %v2147_v46, %v2137_v0  ;;  %v2145_v10 = vpop.permute.xlu1 %2144 }
0x139a   : > { %v2156_v30 = vadd.f32 %v2145_v10, %v2136_v3 }
0x139b   : > { %v2165_v25 = vmul.f32 0.044715, %v2157_v5  ;;  %v2161_v29 = vmul.f32 0.5, %v2157_v5 }
0x139c   : > { %v2164_v24 = vmul.f32 0.044715, %v2156_v30  ;;  %v2151_v14 = vpop.permute.xlu0 %2150  ;;  %v2160_v35 = vmul.f32 0.5, %v2156_v30 }
0x139d   : > { %v2169_v19 = vmul.f32 %v2165_v25, %v2157_v5  ;;  %v2159_v2 = vadd.f32 %v2151_v14, %v2139_v12  ;;  %v2149_v21 = vpop.permute.xlu1 %2148 }
0x139e   : > { %v2168_v27 = vmul.f32 %v2164_v24, %v2156_v30  ;;  %v2158_v32 = vadd.f32 %v2149_v21, %v2138_v31 }
0x139f   : > { %v2173_v9 = vmul.f32 %v2169_v19, %v2157_v5  ;;  %v2167_v50 = vmul.f32 0.044715, %v2159_v2  ;;  %v2163_v38 = vmul.f32 0.5, %v2159_v2 }
0x13a0   : > { %v2172_v26 = vmul.f32 %v2168_v27, %v2156_v30  ;;  %v2166_v60 = vmul.f32 0.044715, %v2158_v32  ;;  %v2162_v47 = vmul.f32 0.5, %v2158_v32  ;;  %v4800_v14 = vpop.permute.xlu0 %2351 }
0x13a1   : > { %v2177_v33 = vadd.f32 %v2173_v9, %v2157_v5  ;;  %v2171_v34 = vmul.f32 %v2167_v50, %v2159_v2  ;;  %v4805_v19 = vpop.permute.xlu1 %2349 }
0x13a2   : > { %v2176_v58 = vadd.f32 %v2172_v26, %v2156_v30  ;;  %v2170_v42 = vmul.f32 %v2166_v60, %v2158_v32 }
0x13a3   : > { %v2181_v59 = vmul.f32 0.7978846, %v2177_v33  ;;  %v2175_v61 = vmul.f32 %v2171_v34, %v2159_v2 }
0x13a4   : > { %v2180_v62 = vmul.f32 0.7978846, %v2176_v58  ;;  %v2174_v37 = vmul.f32 %v2170_v42, %v2158_v32  ;;  %v4807_v26 = vpop.permute.xlu0 %2355 }
0x13a5   : > { %3897 = vtanh.f32 %v2181_v59  ;;  %v2179_v8 = vadd.f32 %v2175_v61, %v2159_v2  ;;  %v4809_v33 = vpop.permute.xlu1 %2353 }
0x13a6   : > { %3899 = vtanh.f32 %v2180_v62  ;;  %v2178_v20 = vadd.f32 %v2174_v37, %v2158_v32 }
0x13a7   : > { %v2183_v1 = vmul.f32 0.7978846, %v2179_v8 }
0x13a8   : > { %v2182_v4 = vmul.f32 0.7978846, %v2178_v20 }
0x13a9   : > { %3901 = vtanh.f32 %v2183_v1 }
0x13aa   : > { %3903 = vtanh.f32 %v2182_v4  ;;  %v4826_v4 = vpop.permute.xlu0 %2359 }
0x13af   : > { %v3898_v6 = vpop.eup %3897 }
0x13b0   : > { %v3900_v15 = vpop.eup %3899  ;;  %v2189_v28 = vadd.f32 1.0, %v3898_v6  ;;  %v4830_v6 = vpop.permute.xlu1 %2357 }
0x13b1   : > { %v2188_v22 = vadd.f32 1.0, %v3900_v15 }
0x13b2   : > { %v2193_v56 = vmul.f32 %v2189_v28, %v2161_v29 }
0x13b3   : > { %v3902_v43 = vpop.eup %3901  ;;  %v2192_v13 = vmul.f32 %v2188_v22, %v2160_v35  ;;  %v4840_v35 = vpop.permute.xlu0 %2363 }
0x13b4   : > { %v3904_v39 = vpop.eup %3903  ;;  %v2191_v40 = vadd.f32 1.0, %v3902_v43  ;;  %v2197_v41 = vadd.f32 %v2193_v56, %v4574_v7  ;;  %v4844_v56 = vpop.permute.xlu1 %2361 }
0x13b5   : > { %v2190_v0 = vadd.f32 1.0, %v3904_v39  ;;  %v2196_v3 = vadd.f32 %v2192_v13, %v4577_v44 }
0x13b6   : > { %v2195_v46 = vmul.f32 %v2191_v40, %v2163_v38  ;;  %v4784_v10 = vmul.f32 0.33333334, %v2197_v41 }
0x13b7   : > { %v2194_v12 = vmul.f32 %v2190_v0, %v2162_v47  ;;  %v4786_v5 = vmul.f32 0.33333334, %v2196_v3 }
0x13b8   : > { %v2199_v30 = vadd.f32 %v2195_v46, %v4587_v45  ;;  %v3247_v45 = vld [vmem:[%s5075_s11] ss:$0 sm:$0xff] }
0x13b9   : > { %v2225_v25 = vpack.c.bf16 %v4784_v10, %v4786_v5  ;;  %v2198_v31 = vadd.f32 %v2194_v12, %v4591_v63 }
0x13ba   : > { %v4792_v24 = vmul.f32 0.33333334, %v2199_v30 }
0x13bb   : > { %3565 = vmatprep.mubr.msk.bf16.mxu1 %vm654_vm2, %v2225_v25  ;;  %v4795_v7 = vmul.f32 0.33333334, %v2198_v31 }
0x13bd   : > { %v2226_v44 = vpack.c.bf16 %v4792_v24, %v4795_v7 }
0x13bf   : > { %3566 = vmatmul.mubr.msk.bf16.vlgmr.msra.gmra.mrb[16].mxu1 %vm654_vm2, %v2226_v44 }
0x1492   : > { %v3567_v63 = vpop.f32.mrb[16].mxu1 }
0x1493   : > { %v2295_v2 = vadd.f32 %v3567_v63, %v3247_v45  ;;  %v2286_v21 = vpop.f32.mrb[17].mxu1 }
0x1494   : > { %v2287_v27 = vadd.f32 %v3247_v45, %v2286_v21  ;;  %v3568_v32 = vpop.f32.mrb[18].mxu1 }
0x1495   : > { %v2298_v9 = vadd.f32 %v3568_v32, %v3247_v45  ;;  %v2289_v50 = vpop.f32.mrb[19].mxu1  ;;  %v4811_v34 = vmul.f32 0.35355338, %v2295_v2 }
0x1496   : > { %v2290_v60 = vadd.f32 %v3247_v45, %v2289_v50  ;;  %v2301_v59 = vmul.f32 0.35355338, %v2287_v27 }
0x1497   : > { %v4813_v58 = vmul.f32 0.35355338, %v2298_v9  ;;  %v4815_v42 = vpack.c.bf16 %v2298_v9, %v2295_v2 }
0x1498   : > { %v2302_v61 = vmul.f32 0.35355338, %v2290_v60  ;;  %v4817_v62 = vpack.c.bf16 %v2290_v60, %v2287_v27 }
0x1499   : > { %v2306_v37 = vpack.c.bf16 %v4813_v58, %v4811_v34  ;;  %v2374_v8 = vmul.bf16 %v4800_v14, %v4815_v42  ;;  %v2376_v15 = vmul.bf16 %v4807_v26, %v4815_v42  ;;  %v2378_v28 = vmul.bf16 %v4826_v4, %v4815_v42 }
0x149a   : > { %v2305_v20 = vpack.c.bf16 %v2302_v61, %v2301_v59  ;;  %v2373_v1 = vmul.bf16 %v4805_v19, %v4817_v62  ;;  %v2375_v29 = vmul.bf16 %v4809_v33, %v4817_v62  ;;  %v2377_v22 = vmul.bf16 %v4830_v6, %v4817_v62 }
0x149b   : > { %2483 = vrot.lane.b32.xlu0 %v2374_v8, %s5085_s26  ;;  %v2380_v43 = vmul.bf16 %v4840_v35, %v4815_v42  ;;  %v2379_v13 = vmul.bf16 %v4844_v56, %v4817_v62 }
0x149c   : > { %2481 = vrot.lane.b32.xlu1 %v2373_v1, %s5085_s26  ;;  %3585 = vmatprep.mubr.msk.bf16.mxu0 %vm654_vm2, %v2305_v20 }
0x149f   : > { %2487 = vrot.lane.b32.xlu0 %v2376_v15, %s5085_s26 }
0x14a0   : > { %2485 = vrot.lane.b32.xlu1 %v2375_v29, %s5085_s26 }
0x14a3   : > { %2491 = vrot.lane.b32.xlu0 %v2378_v28, %s5085_s26  ;;  %v3262_v28 = vld [vmem:[%s535_s19] ss:$0 sm:$0xff]  ;;  %s4009_s19 = smov [#allocation2]  }
0x14a4   : > { %2489 = vrot.lane.b32.xlu1 %v2377_v22, %s5085_s26  ;;  %s3941_s23 = sshll.u32 %s4009_s19, 4  ;;  %s3942_s23 = int_to_ptr.vmem [resolvable:$false] %s3941_s23 }
0x14a5   : > { %s3943_s29 = scalar_lea.vmem %s3942_s23, 256 }
0x14a7   : > { %2495 = vrot.lane.b32.xlu0 %v2380_v43, %s5085_s26  ;;  %v2470_v43 = vld [vmem:[%s5071_s7 + $0x8] sm:$0xff] }
0x14a8   : > { %2493 = vrot.lane.b32.xlu1 %v2379_v13, %s5085_s26  ;;  %s5101_s26 = smov 96  }
0x14ab   : > { %2383 = vrot.lane.b32.xlu0 %v4725_v49, %s5089_s28 }
0x14ac   : > { %2381 = vrot.lane.b32.xlu1 %v4730_v52, %s5089_s28 }
0x14af   : > { %2387 = vrot.lane.b32.xlu0 %v4739_v51, %s5089_s28 }
0x14b0   : > { %2385 = vrot.lane.b32.xlu1 %v4744_v53, %s5089_s28 }
0x14b3   : > { %2391 = vrot.lane.b32.xlu0 %v4753_v55, %s5089_s28 }
0x14b4   : > { %2389 = vrot.lane.b32.xlu1 %v4758_v23, %s5089_s28 }
0x14b7   : > { %2395 = vrot.lane.b32.xlu0 %v4767_v57, %s5089_s28 }
0x14b8   : > { %2393 = vrot.lane.b32.xlu1 %v4772_v54, %s5089_s28 }
0x150d   : > { %v2484_v49 = vpop.permute.xlu0 %2483 }
0x150e   : > { %v2482_v52 = vpop.permute.xlu1 %2481  ;;  %v2507_v23 = vsel %vm654_vm2, %v2484_v49, 0 }
0x150f   : > { %v2504_v39 = vsel %vm654_vm2, %v2482_v52, 0  ;;  %3691 = vmatprep.subr.msk.bf16.mxu0 %vm654_vm2, %v2482_v52 }
0x1510   : > { %3570 = vmatpush3.bf16.xpose.msra.mxu0 %v2504_v39 }
0x1511   : > { %v2488_v51 = vpop.permute.xlu0 %2487  ;;  %3692 = vmatprep.subr.msk.bf16.mxu0 %vm654_vm2, %v2484_v49 }
0x1512   : > { %v2486_v53 = vpop.permute.xlu1 %2485  ;;  %v2513_v31 = vsel %vm654_vm2, %v2488_v51, 0 }
0x1513   : > { %v2510_v0 = vsel %vm654_vm2, %v2486_v53, 0 }
0x1515   : > { %v2492_v55 = vpop.permute.xlu0 %2491 }
0x1516   : > { %v2490_v38 = vpop.permute.xlu1 %2489  ;;  %v2519_v27 = vsel %vm654_vm2, %v2492_v55, 0 }
0x1517   : > { %v2516_v21 = vsel %vm654_vm2, %v2490_v38, 0 }
0x1518   : > { %3572 = vmatpush3.bf16.xpose.msra.mxu0 %v2507_v23 }
0x1519   : > { %v2496_v57 = vpop.permute.xlu0 %2495  ;;  %3693 = vmatprep.subr.msk.bf16.mxu0 %vm654_vm2, %v2486_v53 }
0x151a   : > { %v2494_v54 = vpop.permute.xlu1 %2493  ;;  %v2525_v9 = vsel %vm654_vm2, %v2496_v57, 0 }
0x151b   : > { %v2522_v32 = vsel %vm654_vm2, %v2494_v54, 0 }
0x151d   : > { %v2384_v40 = vpop.permute.xlu0 %2383 }
0x151e   : > { %v2406_v41 = vmul.bf16 %v2384_v40, %v4815_v42  ;;  %v2382_v47 = vpop.permute.xlu1 %2381 }
0x151f   : > { %v2405_v44 = vmul.bf16 %v2382_v47, %v4817_v62 }
0x1520   : > { %2423 = vrot.lane.b32.xlu1 %v2406_v41, %s5089_s28  ;;  %3574 = vmatpush3.bf16.xpose.msra.mxu0 %v2510_v0 }
0x1521   : > { %v2388_v3 = vpop.permute.xlu0 %2387  ;;  %3694 = vmatprep.subr.msk.bf16.mxu0 %vm654_vm2, %v2488_v51  ;;  %v2472_v51 = vld [vmem:[%s5071_s7 + $0x18] sm:$0xff] }
0x1522   : > { %v2408_v46 = vmul.bf16 %v2388_v3, %v4815_v42  ;;  %v2386_v12 = vpop.permute.xlu1 %2385 }
0x1523   : > { %v2407_v63 = vmul.bf16 %v2386_v12, %v4817_v62 }
0x1524   : > { %2427 = vrot.lane.b32.xlu1 %v2408_v46, %s5089_s28 }
0x1525   : > { %v2392_v30 = vpop.permute.xlu0 %2391 }
0x1526   : > { %v2410_v25 = vmul.bf16 %v2392_v30, %v4815_v42  ;;  %v2390_v45 = vpop.permute.xlu1 %2389 }
0x1527   : > { %v2409_v2 = vmul.bf16 %v2390_v45, %v4817_v62 }
0x1528   : > { %2431 = vrot.lane.b32.xlu0 %v2410_v25, %s5089_s28  ;;  %3576 = vmatpush3.bf16.xpose.msra.mxu0 %v2513_v31 }
0x1529   : > { %2421 = vrot.lane.b32.xlu1 %v2405_v44, %s5089_s28  ;;  %3695 = vmatprep.subr.msk.bf16.mxu0 %vm654_vm2, %v2490_v38  ;;  %v2396_v59 = vpop.permute.xlu0 %2395 }
0x152a   : > { %v2394_v50 = vpop.permute.xlu1 %2393  ;;  %v2412_v40 = vmul.bf16 %v2396_v59, %v4815_v42 }
0x152c   : > { %2425 = vrot.lane.b32.xlu0 %v2407_v63, %s5089_s28 }
0x152d   : > { %2429 = vrot.lane.b32.xlu1 %v2409_v2, %s5089_s28  ;;  %s5100_s28 = smov 32  }
0x1530   : > { %3578 = vmatpush3.bf16.xpose.msra.mxu0 %v2516_v21 }
0x1531   : > { %3696 = vmatprep.subr.msk.bf16.mxu0 %vm654_vm2, %v2492_v55 }
0x1538   : > { %3580 = vmatpush3.bf16.xpose.msra.mxu0 %v2519_v27 }
0x1539   : > { %3697 = vmatprep.subr.msk.bf16.mxu0 %vm654_vm2, %v2494_v54  ;;  %v2411_v54 = vmul.bf16 %v2394_v50, %v4817_v62 }
0x1540   : > { %3582 = vmatpush3.bf16.xpose.msra.mxu0 %v2522_v32 }
0x1541   : > { %3698 = vmatprep.subr.msk.bf16.mxu0 %vm654_vm2, %v2496_v57 }
0x1548   : > { %3584 = vmatpush3.bf16.xpose.msra.mxu0 %v2525_v9 }
0x154f   : > { %3586 = vmatmul.mubr.msk.bf16.vlgmr.msra.gmra.mrb[20].mxu0 %vm654_vm2, %v2306_v37 }
0x1592   : > { %v2424_v60 = vpop.permute.xlu1 %2423 }
0x1593   : > { %v2443_v15 = vsel %vm654_vm2, %v2424_v60, %v4800_v14 }
0x1596   : > { %v2428_v61 = vpop.permute.xlu1 %2427 }
0x1597   : > { %v2451_v58 = vsel %vm654_vm2, %v2428_v61, %v4807_v26  ;;  %v2471_v26 = vld [vmem:[%s5071_s7 + $0x10] sm:$0xff] }
0x159a   : > { %v2432_v8 = vpop.permute.xlu0 %2431 }
0x159b   : > { %v2422_v20 = vpop.permute.xlu1 %2421  ;;  %v2459_v14 = vsel %vm654_vm2, %v2432_v8, %v4826_v4 }
0x159c   : > { %v2439_v1 = vsel %vm654_vm2, %v2422_v20, %v4805_v19 }
0x159d   : > { %3589 = vmatprep.subr.bf16.mxu1 %v2439_v1 }
0x159e   : > { %3590 = vmatpush3.bf16.msra.mxu1 %v2439_v1  ;;  %v2426_v29 = vpop.permute.xlu0 %2425 }
0x159f   : > { %3591 = vmatprep.subr.bf16.mxu1 %v2443_v15  ;;  %v2447_v34 = vsel %vm654_vm2, %v2426_v29, %v4809_v33  ;;  %v2430_v37 = vpop.permute.xlu1 %2429 }
0x15a0   : > { %v2455_v19 = vsel %vm654_vm2, %v2430_v37, %v4830_v6  ;;  %v2469_v6 = vld [vmem:[%s5071_s7] sm:$0xff] }
0x15a2   : > { %3592 = vmatpush3.bf16.msra.mxu1 %v2443_v15 }
0x15a3   : > { %3593 = vmatprep.subr.bf16.mxu1 %v2447_v34 }
0x15a6   : > { %3594 = vmatpush3.bf16.msra.mxu1 %v2447_v34 }
0x15a7   : > { %3595 = vmatprep.subr.bf16.mxu1 %v2451_v58 }
0x15aa   : > { %3596 = vmatpush3.bf16.msra.mxu1 %v2451_v58 }
0x15ab   : > { %3597 = vmatprep.subr.bf16.mxu1 %v2455_v19 }
0x15ae   : > { %3598 = vmatpush3.bf16.msra.mxu1 %v2455_v19 }
0x15af   : > { %3599 = vmatprep.subr.bf16.mxu1 %v2459_v14 }
0x15b2   : > { %3600 = vmatpush3.bf16.msra.mxu1 %v2459_v14 }
0x1622   : > { %v3587_v33 = vpop.f32.mrb[20].mxu0 }
0x1623   : > { %v2570_v22 = vadd.f32 %v3587_v33, %v2471_v26  ;;  %v2561_v4 = vpop.f32.mrb[21].mxu0 }
0x1624   : > { %v3588_v13 = vpop.f32.mrb[22].mxu0  ;;  %v2562_v49 = vadd.f32 %v2561_v4, %v2469_v6 }
0x1625   : > { %v2564_v52 = vpop.f32.mrb[23].mxu0  ;;  %v2585_v39 = vadd.f32 %v3262_v28, %v2570_v22  ;;  %v2573_v38 = vadd.f32 %v3588_v13, %v2472_v51 }
0x1626   : > { %v2565_v53 = vadd.f32 %v2564_v52, %v2470_v43  ;;  %v2583_v23 = vadd.f32 %v3262_v28, %v2562_v49 }
0x1627   : > { %2591 = vmax.xlane.f32.xlu0 %v2585_v39  ;;  %v2586_v57 = vadd.f32 %v3262_v28, %v2573_v38 }
0x1628   : > { %v2584_v55 = vadd.f32 %v3262_v28, %v2565_v53 }
0x162a   : > { %2589 = vmax.xlane.f32.xlu1 %v2584_v55 }
0x162b   : > { %2587 = vmax.xlane.f32.xlu0 %v2583_v23 }
0x162f   : > { %2593 = vmax.xlane.f32.xlu0 %v2586_v57 }
0x163b   : > { %2433 = vrot.lane.b32.xlu1 %v2411_v54, %s5099_s17 }
0x163f   : > { %2688 = vrot.lane.b32.xlu1 %v4711_v48, %s5100_s28 }
0x1645   : > { %2435 = vrot.lane.b32.xlu0 %v2412_v40, %s5099_s17 }
0x16b4   : > { %v2592_v41 = vpop.xlane.xlu0 %2591 }
0x16b5   : > { %v2597_v0 = vsub.f32 %v2585_v39, %v2592_v41 }
0x16b7   : > { %v2590_v47 = vpop.xlane.xlu1 %2589  ;;  %v2603_v44 = vmul.f32 1.442695, %v2597_v0 }
0x16b8   : > { %v2596_v3 = vsub.f32 %v2584_v55, %v2590_v47  ;;  %v2588_v46 = vpop.xlane.xlu0 %2587 }
0x16b9   : > { %v2595_v12 = vsub.f32 %v2583_v23, %v2588_v46 }
0x16ba   : > { %v2601_v30 = vmul.f32 1.442695, %v2596_v3 }
0x16bb   : > { %v2599_v25 = vmul.f32 1.442695, %v2595_v12  ;;  %v2434_v31 = vpop.permute.xlu1 %2433 }
0x16bc   : > { %3905 = vpow2.f32 %v2601_v30  ;;  %v2594_v62 = vpop.xlane.xlu0 %2593  ;;  %v2463_v45 = vsel %vm654_vm2, %v2434_v31, %v4844_v56 }
0x16bd   : > { %3907 = vpow2.f32 %v2599_v25  ;;  %v2598_v48 = vsub.f32 %v2586_v57, %v2594_v62  ;;  %3601 = vmatprep.subr.bf16.mxu1 %v2463_v45 }
0x16be   : > { %3602 = vmatpush3.bf16.msra.mxu1 %v2463_v45  ;;  %3909 = vpow2.f32 %v2603_v44 }
0x16bf   : > { %v2605_v42 = vmul.f32 1.442695, %v2598_v48  ;;  %v2689_v60 = vpop.permute.xlu1 %2688 }
0x16c0   : > { %v2436_v63 = vpop.permute.xlu0 %2435 }
0x16c1   : > { %3911 = vpow2.f32 %v2605_v42  ;;  %v2467_v2 = vsel %vm654_vm2, %v2436_v63, %v4840_v35 }
0x16c2   : > { %3603 = vmatprep.subr.bf16.mxu1 %v2467_v2 }
0x16c3   : > { %3604 = vmatpush3.bf16.msra.mxu1 %v2467_v2 }
0x16c4   : > { %3609 = vmatprep.subr.bf16.mxu1 %v2689_v60 }
0x16c6   : > { %v3906_v21 = vpop.eup %3905 }
0x16c7   : > { %v3908_v27 = vpop.eup %3907 }
0x16c8   : > { %v2607_v32 = vpack.c.bf16 %v3906_v21, %v3908_v27  ;;  %v3910_v9 = vpop.eup %3909 }
0x16ca   : > { %3605 = vmatprep.mubr.bf16.mxu1 %v2607_v32 }
0x16cb   : > { %v3912_v50 = vpop.eup %3911 }
0x16cc   : > { %v2608_v56 = vpack.c.bf16 %v3912_v50, %v3910_v9  ;;  %v3869_v9 = vld [vmem:[%s5077_s13] sm:$0xff]   ;;  %v3870_v50 = vld [vmem:[%s5077_s13 + $0x8] sm:$0xff]  }
0x16ce   : > { %3606 = vmatmul.mubr.bf16.vlgmr.msra.gmra.mrb[20].mxu1 %v2608_v56  ;;  %v3871_v56 = vld [vmem:[%s5079_s15] sm:$0xff]  }
0x16cf   : > { %3610 = vmatpush3.bf16.msra.mxu1 %v2689_v60 }
0x17a1   : > { %v3607_v59 = vpop.f32.mrb[20].mxu1 }
0x17a2   : > { %3913 = vrcp.f32 %v3607_v59  ;;  %v2643_v61 = vpop.f32.mrb[21].mxu1 }
0x17a3   : > { %v3608_v8 = vpop.f32.mrb[22].mxu1 }
0x17a4   : > { %v2646_v20 = vpop.f32.mrb[23].mxu1 }
0x17a5   : > { %3915 = vrcp.f32 %v2646_v20 }
0x17a6   : > { %3917 = vrcp.f32 %v2643_v61 }
0x17a7   : > { %3919 = vrcp.f32 %v3608_v8 }
0x17ac   : > { %v3914_v35 = vpop.eup %3913 }
0x17ad   : > { %2670 = vrot.lane.b32.xlu0 %v3914_v35, %s5101_s26 }
0x17af   : > { %v3916_v1 = vpop.eup %3915 }
0x17b0   : > { %v3918_v15 = vpop.eup %3917  ;;  %2668 = vrot.lane.b32.xlu1 %v3916_v1, %s5101_s26 }
0x17b1   : > { %2666 = vrot.lane.b32.xlu0 %v3918_v15, %s5101_s26  ;;  %v3920_v29 = vpop.eup %3919 }
0x17b4   : > { %2672 = vrot.lane.b32.xlu1 %v3920_v29, %s5101_s26 }
0x17b5   : > { %2690 = vrot.lane.b32.xlu0 %v4716_v17, %s5100_s28  ;;  %v4952_v17 = vld [vmem:[%s5076_s12] sm:$0x3f] }
0x17b6   : > { %v2687_v43 = vrot.slane %v4952_v17, %v4256_v16 }
0x181f   : > { %v2671_v34 = vpop.permute.xlu0 %2670 }
0x1820   : > { %v2680_v6 = vmul.f32 %v3607_v59, %v2671_v34 }
0x1822   : > { %v2669_v58 = vpop.permute.xlu1 %2668 }
0x1823   : > { %v2679_v37 = vmul.f32 %v2669_v58, %v2646_v20  ;;  %v2667_v19 = vpop.permute.xlu0 %2666 }
0x1824   : > { %v2678_v14 = vmul.f32 %v2667_v19, %v2643_v61  ;;  %v2809_v19 = vrot.slane %v4952_v17, %v4346_v11 }
0x1826   : > { %v2682_v26 = vpack.c.bf16 %v2679_v37, %v2678_v14  ;;  %v2673_v33 = vpop.permute.xlu1 %2672 }
0x1827   : > { %v2681_v28 = vmul.f32 %v3608_v8, %v2673_v33  ;;  %v2691_v22 = vpop.permute.xlu0 %2690 }
0x1828   : > { %3611 = vmatprep.subr.bf16.mxu1 %v2691_v22  ;;  %3613 = vmatprep.mubr.msk.bf16.mxu1 %vm654_vm2, %v2682_v26 }
0x1829   : > { %v2683_v4 = vpack.c.bf16 %v2681_v28, %v2680_v6  ;;  %3612 = vmatpush3.bf16.msra.mxu1 %v2691_v22  ;;  %v2817_v22 = vrot.slane %v4952_v17, %v4361_v36  ;;  %v3873_v36 = vld [vmem:[%s5079_s15 + $0x10] sm:$0xff]  }
0x182a   : > { %3617 = vmatprep.subr.bf16.mxu1 %v3869_v9 }
0x182c   : > { %3614 = vmatmul.mubr.msk.bf16.vlgmr.msra.gmra.mrb[24].mxu1 %vm654_vm2, %v2683_v4 }
0x182d   : > { %3618 = vmatpush3.bf16.msra.mxu1 %v3869_v9 }
0x182e   : > { %3619 = vmatprep.subr.bf16.mxu1 %v3870_v50 }
0x1831   : > { %3620 = vmatpush3.bf16.msra.mxu1 %v3870_v50 }
0x1832   : > { %3625 = vmatprep.subr.bf16.mxu1 %v3871_v56 }
0x18ff   : > { %v3615_v13 = vpop.f32.mrb[24].mxu1 }
0x1900   : > { %v2734_v49 = vpop.f32.mrb[25].mxu1  ;;  %v2743_v55 = vadd.f32 %v3615_v13, %v2687_v43 }
0x1901   : > { %v2735_v52 = vadd.f32 %v2734_v49, %v2687_v43  ;;  %v3616_v39 = vpop.f32.mrb[26].mxu1 }
0x1902   : > { %v2746_v51 = vadd.f32 %v3616_v39, %v2687_v43  ;;  %v2737_v53 = vpop.f32.mrb[27].mxu1  ;;  %v2751_v16 = vadd.f32 %v2743_v55, %v4795_v7 }
0x1903   : > { %v2738_v38 = vadd.f32 %v2737_v53, %v2687_v43  ;;  %v2749_v23 = vadd.f32 %v2735_v52, %v4786_v5 }
0x1904   : > { %v2752_v40 = vadd.f32 %v2746_v51, %v4792_v24  ;;  %v2759_v0 = vsel %vm654_vm2, %v2751_v16, 0.0 }
0x1905   : > { %v2753_v57 = vsel %vm654_vm2, %v2749_v23, 0.0  ;;  %v2750_v54 = vadd.f32 %v2738_v38, %v4784_v10 }
0x1906   : > { %2754 = vadd.xlane.f32.xlu1 %v2753_v57  ;;  %v2762_v47 = vsel %vm654_vm2, %v2752_v40, 0.0 }
0x1907   : > { %v2756_v41 = vsel %vm654_vm2, %v2750_v54, 0.0 }
0x1908   : > { %2757 = vadd.xlane.f32.xlu0 %v2756_v41  ;;  %v3265_v41 = vld [vmem:[%s5078_s14] ss:$0 sm:$0xff] }
0x190a   : > { %2763 = vadd.xlane.f32.xlu1 %v2762_v47 }
0x190c   : > { %2760 = vadd.xlane.f32.xlu0 %v2759_v0 }
0x1993   : > { %v2755_v3 = vpop.xlane.xlu1 %2754 }
0x1994   : > { %v2766_v5 = vmul.f32 0.03125, %v2755_v3 }
0x1995   : > { %v2758_v46 = vpop.xlane.xlu0 %2757 }
0x1996   : > { %v2770_v12 = vsub.f32 %v2749_v23, %v2766_v5  ;;  %v2767_v30 = vmul.f32 0.03125, %v2758_v46 }
0x1997   : > { %v2764_v10 = vpop.xlane.xlu1 %2763 }
0x1998   : > { %v2771_v25 = vsub.f32 %v2750_v54, %v2767_v30  ;;  %v2769_v24 = vmul.f32 0.03125, %v2764_v10  ;;  %v2774_v31 = vmul.f32 %v2770_v12, %v2770_v12  ;;  %v3872_v54 = vld [vmem:[%s5079_s15 + $0x8] sm:$0xff]  }
0x1999   : > { %v2761_v44 = vpop.xlane.xlu0 %2760 }
0x199a   : > { %v2773_v62 = vsub.f32 %v2752_v40, %v2769_v24  ;;  %v2768_v45 = vmul.f32 0.03125, %v2761_v44  ;;  %v2778_v7 = vsel %vm654_vm2, %v2774_v31, 0.0  ;;  %v2775_v48 = vmul.f32 %v2771_v25, %v2771_v25  ;;  %v3874_v40 = vld [vmem:[%s5079_s15 + $0x18] sm:$0xff]  }
0x199b   : > { %2779 = vadd.xlane.f32.xlu0 %v2778_v7 }
0x199c   : > { %v2772_v42 = vsub.f32 %v2751_v16, %v2768_v45  ;;  %v2781_v63 = vsel %vm654_vm2, %v2775_v48, 0.0  ;;  %v2777_v2 = vmul.f32 %v2773_v62, %v2773_v62  ;;  %v2918_v45 = vsub.s32 3, %v4188_v18 }
0x199d   : > { %2782 = vadd.xlane.f32.xlu1 %v2781_v63 }
0x199e   : > { %v2776_v21 = vmul.f32 %v2772_v42, %v2772_v42  ;;  %v2787_v32 = vsel %vm654_vm2, %v2777_v2, 0.0  ;;  %v2919_v7 = vrot.slane %v4952_v17, %v2918_v45 }
0x19a0   : > { %v2784_v27 = vsel %vm654_vm2, %v2776_v21, 0.0 }
0x19a1   : > { %2785 = vadd.xlane.f32.xlu0 %v2784_v27  ;;  %2788 = vadd.xlane.f32.xlu1 %v2787_v32 }
0x1a28   : > { %v2780_v60 = vpop.xlane.xlu0 %2779 }
0x1a29   : > { %v2790_v59 = vmul.f32 0.03125, %v2780_v60 }
0x1a2a   : > { %v2783_v61 = vpop.xlane.xlu1 %2782 }
0x1a2b   : > { %v2794_v8 = vadd.f32 1e-05, %v2790_v59  ;;  %v2791_v20 = vmul.f32 0.03125, %v2783_v61 }
0x1a2d   : > { %3921 = vrsqrt.f32 %v2794_v8  ;;  %v2795_v35 = vadd.f32 1e-05, %v2791_v20 }
0x1a2e   : > { %v2786_v1 = vpop.xlane.xlu0 %2785  ;;  %v2789_v15 = vpop.xlane.xlu1 %2788 }
0x1a2f   : > { %3923 = vrsqrt.f32 %v2795_v35  ;;  %v2792_v29 = vmul.f32 0.03125, %v2786_v1  ;;  %v2793_v34 = vmul.f32 0.03125, %v2789_v15 }
0x1a31   : > { %v2796_v58 = vadd.f32 1e-05, %v2792_v29  ;;  %v2797_v37 = vadd.f32 1e-05, %v2793_v34 }
0x1a33   : > { %3925 = vrsqrt.f32 %v2796_v58 }
0x1a34   : > { %3927 = vrsqrt.f32 %v2797_v37 }
0x1a37   : > { %v3922_v14 = vpop.eup %3921 }
0x1a38   : > { %v2802_v26 = vmul.f32 %v3922_v14, %v2770_v12 }
0x1a39   : > { %v3924_v33 = vpop.eup %3923 }
0x1a3a   : > { %v2803_v6 = vmul.f32 %v3924_v33, %v2771_v25  ;;  %v2810_v28 = vmul.f32 %v2809_v19, %v2802_v26 }
0x1a3c   : > { %v2811_v4 = vmul.f32 %v2809_v19, %v2803_v6  ;;  %v2818_v52 = vadd.f32 %v2817_v22, %v2810_v28 }
0x1a3d   : > { %v3926_v43 = vpop.eup %3925 }
0x1a3e   : > { %v3928_v13 = vpop.eup %3927  ;;  %v2804_v49 = vmul.f32 %v3926_v43, %v2772_v42  ;;  %v2819_v39 = vadd.f32 %v2817_v22, %v2811_v4 }
0x1a3f   : > { %v2805_v51 = vmul.f32 %v3928_v13, %v2773_v62 }
0x1a40   : > { %v2812_v53 = vmul.f32 %v2809_v19, %v2804_v49  ;;  %v2822_v55 = vpack.c.bf16 %v2819_v39, %v2818_v52 }
0x1a41   : > { %v2813_v38 = vmul.f32 %v2809_v19, %v2805_v51 }
0x1a42   : > { %3621 = vmatprep.mubr.msk.bf16.mxu1 %vm654_vm2, %v2822_v55  ;;  %v2820_v11 = vadd.f32 %v2817_v22, %v2812_v53 }
0x1a43   : > { %v2821_v23 = vadd.f32 %v2817_v22, %v2813_v38 }
0x1a45   : > { %v2823_v57 = vpack.c.bf16 %v2821_v23, %v2820_v11 }
0x1a47   : > { %3622 = vmatmul.mubr.msk.bf16.vlgmr.msra.gmra.mrb[28].mxu1 %vm654_vm2, %v2823_v57 }
0x1a48   : > { %3626 = vmatpush3.bf16.msra.mxu1 %v3871_v56 }
0x1a49   : > { %3627 = vmatprep.subr.bf16.mxu1 %v3872_v54 }
0x1a4c   : > { %3628 = vmatpush3.bf16.msra.mxu1 %v3872_v54 }
0x1a4d   : > { %3629 = vmatprep.subr.bf16.mxu1 %v3873_v36 }
0x1a50   : > { %3630 = vmatpush3.bf16.msra.mxu1 %v3873_v36 }
0x1a51   : > { %3631 = vmatprep.subr.bf16.mxu1 %v3874_v40 }
0x1a54   : > { %3632 = vmatpush3.bf16.msra.mxu1 %v3874_v40 }
0x1b1a   : > { %v3623_v16 = vpop.f32.mrb[28].mxu1 }
0x1b1b   : > { %v2896_v47 = vadd.f32 %v3623_v16, %v3265_v41  ;;  %v2887_v0 = vpop.f32.mrb[29].mxu1 }
0x1b1c   : > { %v2888_v3 = vadd.f32 %v3265_v41, %v2887_v0  ;;  %v3624_v5 = vpop.f32.mrb[30].mxu1  ;;  %v3057_v0 = vsub.s32 4, %v4188_v18 }
0x1b1d   : > { %v2899_v46 = vadd.f32 %v3624_v5, %v3265_v41  ;;  %v2890_v12 = vpop.f32.mrb[31].mxu1  ;;  %v2904_v10 = vmax.f32 %v2896_v47, 0.0 }
0x1b1e   : > { %v2891_v30 = vadd.f32 %v3265_v41, %v2890_v12  ;;  %v2902_v24 = vmax.f32 %v2888_v3, 0.0  ;;  %v3065_v3 = vsub.s32 5, %v4188_v18  ;;  %v3058_v5 = vrot.slane %v4952_v17, %v3057_v0 }
0x1b1f   : > { %v2905_v25 = vmax.f32 %v2899_v46, 0.0 }
0x1b20   : > { %v2903_v31 = vmax.f32 %v2891_v30, 0.0  ;;  %v3066_v30 = vrot.slane %v4952_v17, %v3065_v3 }
0x1b21   : > { %v2907_v44 = vpack.c.bf16 %v2905_v25, %v2904_v10 }
0x1b22   : > { %v2906_v62 = vpack.c.bf16 %v2903_v31, %v2902_v24 }
0x1b24   : > { %3633 = vmatprep.mubr.msk.bf16.mxu1 %vm659_vm3, %v2906_v62 }
0x1b25   : > { %3634 = vmatmul.mubr.msk.bf16.vlgmr.msra.gmra.mrb[32].mxu1 %vm659_vm3, %v2907_v44 }
0x1bf8   : > { %v3635_v48 = vpop.f32.mrb[32].mxu1 }
0x1bf9   : > { %v2993_v42 = vadd.f32 %v3635_v48, %v2919_v7  ;;  %v2984_v63 = vpop.f32.mrb[33].mxu1 }
0x1bfa   : > { %v2985_v2 = vadd.f32 %v2984_v63, %v2919_v7  ;;  %v3636_v21 = vpop.f32.mrb[34].mxu1 }
0x1bfb   : > { %v3001_v27 = vadd.f32 %v2993_v42, %v2820_v11  ;;  %v2987_v32 = vpop.f32.mrb[35].mxu1  ;;  %v2996_v9 = vadd.f32 %v3636_v21, %v2919_v7 }
0x1bfc   : > { %v2988_v50 = vadd.f32 %v2987_v32, %v2919_v7  ;;  %v2999_v56 = vadd.f32 %v2985_v2, %v2818_v52 }
0x1bfd   : > { %v3009_v60 = vsel %vm654_vm2, %v3001_v27, 0.0  ;;  %v3002_v61 = vadd.f32 %v2996_v9, %v2821_v23 }
0x1bfe   : > { %v3000_v59 = vadd.f32 %v2988_v50, %v2819_v39  ;;  %3010 = vadd.xlane.f32.xlu1 %v3009_v60  ;;  %v3003_v20 = vsel %vm654_vm2, %v2999_v56, 0.0 }
0x1bff   : > { %v3012_v35 = vsel %vm654_vm2, %v3002_v61, 0.0 }
0x1c00   : > { %v3006_v8 = vsel %vm654_vm2, %v3000_v59, 0.0 }
0x1c01   : > { %3007 = vadd.xlane.f32.xlu0 %v3006_v8 }
0x1c02   : > { %3004 = vadd.xlane.f32.xlu1 %v3003_v20 }
0x1c05   : > { %3013 = vadd.xlane.f32.xlu0 %v3012_v35 }
0x1c8b   : > { %v3011_v1 = vpop.xlane.xlu1 %3010 }
0x1c8c   : > { %v3017_v15 = vmul.f32 0.03125, %v3011_v1 }
0x1c8e   : > { %v3021_v29 = vsub.f32 %v3001_v27, %v3017_v15  ;;  %v3008_v34 = vpop.xlane.xlu0 %3007 }
0x1c8f   : > { %v3016_v58 = vmul.f32 0.03125, %v3008_v34  ;;  %v3005_v37 = vpop.xlane.xlu1 %3004 }
0x1c90   : > { %v3015_v19 = vmul.f32 0.03125, %v3005_v37  ;;  %v3025_v14 = vmul.f32 %v3021_v29, %v3021_v29 }
0x1c91   : > { %v3020_v26 = vsub.f32 %v3000_v59, %v3016_v58 }
0x1c92   : > { %v3019_v33 = vsub.f32 %v2999_v56, %v3015_v19  ;;  %v3014_v6 = vpop.xlane.xlu0 %3013  ;;  %v3033_v28 = vsel %vm654_vm2, %v3025_v14, 0.0 }
0x1c93   : > { %v3018_v22 = vmul.f32 0.03125, %v3014_v6  ;;  %3034 = vadd.xlane.f32.xlu1 %v3033_v28  ;;  %v3024_v4 = vmul.f32 %v3020_v26, %v3020_v26 }
0x1c94   : > { %v3023_v43 = vmul.f32 %v3019_v33, %v3019_v33 }
0x1c95   : > { %v3022_v13 = vsub.f32 %v3002_v61, %v3018_v22  ;;  %v3030_v49 = vsel %vm654_vm2, %v3024_v4, 0.0 }
0x1c96   : > { %3031 = vadd.xlane.f32.xlu0 %v3030_v49  ;;  %v3027_v52 = vsel %vm654_vm2, %v3023_v43, 0.0 }
0x1c97   : > { %3028 = vadd.xlane.f32.xlu1 %v3027_v52  ;;  %v3026_v39 = vmul.f32 %v3022_v13, %v3022_v13 }
0x1c99   : > { %v3036_v51 = vsel %vm654_vm2, %v3026_v39, 0.0 }
0x1c9a   : > { %3037 = vadd.xlane.f32.xlu0 %v3036_v51 }
0x1d20   : > { %v3035_v53 = vpop.xlane.xlu1 %3034 }
0x1d21   : > { %v3041_v55 = vmul.f32 0.03125, %v3035_v53 }
0x1d23   : > { %v3045_v38 = vadd.f32 1e-05, %v3041_v55  ;;  %v3032_v11 = vpop.xlane.xlu0 %3031 }
0x1d24   : > { %v3040_v23 = vmul.f32 0.03125, %v3032_v11  ;;  %v3029_v57 = vpop.xlane.xlu1 %3028 }
0x1d25   : > { %3929 = vrsqrt.f32 %v3045_v38  ;;  %v3039_v54 = vmul.f32 0.03125, %v3029_v57 }
0x1d26   : > { %v3044_v36 = vadd.f32 1e-05, %v3040_v23 }
0x1d27   : > { %v3043_v40 = vadd.f32 1e-05, %v3039_v54  ;;  %v3038_v41 = vpop.xlane.xlu0 %3037 }
0x1d28   : > { %3931 = vrsqrt.f32 %v3044_v36  ;;  %v3042_v16 = vmul.f32 0.03125, %v3038_v41 }
0x1d29   : > { %3933 = vrsqrt.f32 %v3043_v40 }
0x1d2a   : > { %v3046_v47 = vadd.f32 1e-05, %v3042_v16 }
0x1d2c   : > { %3935 = vrsqrt.f32 %v3046_v47 }
0x1d2f   : > { %v3930_v46 = vpop.eup %3929 }
0x1d30   : > { %v3053_v12 = vmul.f32 %v3930_v46, %v3021_v29 }
0x1d32   : > { %v3932_v10 = vpop.eup %3931  ;;  %v3061_v25 = vmul.f32 %v3058_v5, %v3053_v12 }
0x1d33   : > { %v3934_v24 = vpop.eup %3933  ;;  %v3052_v31 = vmul.f32 %v3932_v10, %v3020_v26 }
0x1d34   : > { %v3069_v44 = vadd.f32 %v3066_v30, %v3061_v25  ;;  %v3051_v62 = vmul.f32 %v3934_v24, %v3019_v33 }
0x1d35   : > { %v3060_v45 = vmul.f32 %v3058_v5, %v3052_v31 }
0x1d36   : > { %v3936_v7 = vpop.eup %3935  ;;  %3076 = vrot.lane.b32.xlu1 %v3069_v44, %s5099_s17  ;;  %v3059_v48 = vmul.f32 %v3058_v5, %v3051_v62  ;;  %s3101_s17 = sshll.u32 %s526_s30, 4  ;;  %s5023_s17 = int_to_ptr.vmem [resolvable:$true] %s3101_s17 }
0x1d37   : > { %v3068_v18 = vadd.f32 %v3066_v30, %v3060_v45  ;;  %v3054_v42 = vmul.f32 %v3936_v7, %v3022_v13  ;;  %s3937_s25 = scalar_lea.vmem %s5023_s17, 128  ;;  %p3944_p1 = scmp.lt.s32.totalorder %s5023_s17, %s3942_s23 }
0x1d38   : > { %v3067_v63 = vadd.f32 %v3066_v30, %v3059_v48  ;;  %p3938_p12 = scmp.ne.s32.totalorder %s5023_s17, %s3937_s25  ;;  %p3945_p2 = scmp.lt.s32.totalorder %s3943_s29, %s3937_s25 }
0x1d39   : > { %3072 = vrot.lane.b32.xlu0 %v3068_v18, %s5100_s28  ;;  %v3062_v2 = vmul.f32 %v3058_v5, %v3054_v42  ;;  %s5021_s28 = scalar_lea.hbm %s5080_s16, %s3277_s27 }
0x1d3a   : > { %p3939_p13 = pnand %p3938_p12, %p4133_p5  ;;  %p3946_p3 = por %p3945_p2, %p3944_p1 }
0x1d3b   : > { %v3070_v17 = vadd.f32 %v3066_v30, %v3062_v2 }
0x1d3c   : > { %p3940_p0 = pneg %p3939_p13 }
0x1d3d   : > { %3080 = vrot.lane.b32.xlu1 %v3070_v17, %s5101_s26  ;;  %s3088_s26 = scalar_lea.sflag [#allocation3], %s524_s20 }
0x1d3e   : > { %p3947_p4 = pnand %p3946_p3, %p3940_p0 }
0x1da8   : > { %v3077_v21 = vpop.permute.xlu1 %3076 }
0x1dab   : > { %v3073_v27 = vpop.permute.xlu0 %3072 }
0x1dac   : > { %v3083_v32 = vsel %vm654_vm2, %v3067_v63, %v3073_v27 }
0x1dad   : > { %v3084_v9 = vsel %vm659_vm3, %v3083_v32, %v3077_v21 }
0x1daf   : > { %v3081_v50 = vpop.permute.xlu1 %3080 }
0x1db0   : > { %v3085_v56 = vsel %vm719_vm4, %v3084_v9, %v3081_v50 }
0x1db1   : > { %3086 = vst [vmem:[%s526_s30] sm:$0xff] %v3085_v56 }
0x1db2   : > { %3950 = shalt.err (!%p3947_p4)
}
0x1db3   : > { %s3951_s20 = scalar_lea.hbm %s5021_s28, 128  ;;  %s3955_s18 = scalar_lea.hbm %s5080_s16, 256 }
0x1db4   : > { %p3952_p7 = scmp.ne.s32.totalorder %s5021_s28, %s3951_s20  ;;  %p3956_p10 = scmp.lt.u32.totalorder %s5021_s28, %s5080_s16 }
0x1db5   : > { %p3957_p11 = scmp.lt.u32.totalorder %s3955_s18, %s3951_s20  ;;  %p3959_p13 = scmp.lt.u32.totalorder %s3951_s20, %s5021_s28 }
0x1db6   : > { %p3953_p8 = pnand %p3952_p7, %p4133_p5 }
0x1db7   : > { %p3958_p12 = por %p3957_p11, %p3956_p10 }
0x1db8   : > { %p3954_p9 = pneg %p3953_p8 }
0x1db9   : > { %p3960_p0 = por %p3959_p13, %p3958_p12 }
0x1dbb   : > { %p3961_p1 = pnand %p3960_p0, %p3954_p9 }
0x1dbd   : > { %3964 = shalt.err (!%p3961_p1)
}
0x1dbe   : > { %3699 = dma.vmem_to_hbm [thread:$0]  (%p4133_p5), %s5023_s17, 128, %s5021_s28, %s3088_s26  }
0x1dbf PF: > { %p3705_p2 = scmp.ge.s32.totalorder %s3999_s24, 2  ;;  %s3113_s29 = sand.u32 1, %s3987_s21  }
0x1dc0   : > { %s3114_s27 = scalar_lea.sflag [#allocation3], %s3113_s29 }
0x1dc1   : > { %p3702_p3 = pnand %p3705_p2, %p4137_p6 }
0x1dc3   : > { %3982 = dma.done.wait (!%p3702_p3), %s3114_s27, 128  }
0x1dc4   : > { %3984 = vsyncadd (!%p3702_p3), %s3114_s27, 4294967168  ;;  %s5103_s24 = sld [smem:[#allocation6_spill]]  ;;  %s5104_s20 = sld [smem:[#allocation5_spill]] }
0x1dc5   : > { %s5105_s23 = sld [smem:[#allocation7_spill]]  ;;  %s5106_s21 = smov %s3991_s22 }
0x1dca   : > { %p26_p4 = scmp.ge.s32.totalorder %s5103_s24, 4   ;;  %s5107_s22 = smov %s5104_s20 }
0x1dcc   :  { %28 = sbr.rel (!%p26_p4) target bundleno = 5 (0x5), region = 126 }
0x1dd3   :  { %3119 = vsyncpa [#allocation3], 1 }
0x1dd4   :  { %3121 = vsyncpa [#allocation3 + $0x1], 1 }

</bundles_post_ra>
